<compile_context>
chip_gen: v5e
topology: v5e:2x2
jax: 0.10.0
libtpu: 0.0.40
codegen_flags: <defaults>
</compile_context>

<pallas_src>
import functools
import jax
import jax.numpy as jnp
from jax.experimental import pallas as pl
from jax.experimental.pallas import tpu as pltpu


# ----------------------------------------------------------------------------
# Constant matrices (built once per trace; constant-folded under jit)
# ----------------------------------------------------------------------------

def dft_matrices(n):
    """Forward rfft as [C;-S] (2F,n) and irfft as [RC|RS] (n,2F)."""
    F = n // 2 + 1
    k = jnp.arange(F, dtype=jnp.float32)
    t = jnp.arange(n, dtype=jnp.float32)
    ang = 2.0 * jnp.pi * k[:, None] * t[None, :] / n          # (F, n)
    C = jnp.cos(ang)
    S = jnp.sin(ang)
    FW = jnp.concatenate([C, -S], axis=0)                     # (2F, n): [re ; im]
    wgt = jnp.ones((F,), jnp.float32).at[1:F - 1].set(2.0)    # [1, 2, ..., 2, 1]
    RC = jnp.cos(ang.T) * wgt[None, :] / n                    # (n, F)
    RS = -jnp.sin(ang.T) * wgt[None, :] / n
    INV = jnp.concatenate([RC, RS], axis=1)                   # (n, 2F)
    return FW, INV


def extrapolation_matrix(n, T):
    """fourier_extrapolate(sig, n, n+T): ext[t] = sum_m Et[t, m] * sig[m]."""
    k = jnp.arange(n, dtype=jnp.float32)
    m = jnp.arange(n, dtype=jnp.float32)
    t = jnp.arange(n, n + T, dtype=jnp.float32)
    Ct = jnp.cos(2.0 * jnp.pi * jnp.outer(t, k) / n)          # (T, n)
    St = jnp.sin(2.0 * jnp.pi * jnp.outer(t, k) / n)
    Cm = jnp.cos(2.0 * jnp.pi * jnp.outer(k, m) / n)          # (n, n)
    Sm = jnp.sin(2.0 * jnp.pi * jnp.outer(k, m) / n)
    return (Ct @ Cm + St @ Sm) / n                            # (T, n)


def causal_exp_matrix(alpha, n, include_alpha):
    """W[j, m] = (alpha *) (1-alpha)^(j-m) for m <= j else 0.  alpha scalar or (h,)."""
    idx = jnp.arange(n, dtype=jnp.float32)
    jm = idx[:, None] - idx[None, :]
    mask = jm >= 0
    jm_pos = jnp.maximum(jm, 0.0)
    alpha = jnp.asarray(alpha, jnp.float32)
    base = 1.0 - alpha
    if alpha.ndim == 0:
        pw = base ** jm_pos
        pw = jnp.where(jm_pos == 0.0, 1.0, pw)                # robust diagonal (base -> 0)
        W = jnp.where(mask, pw, 0.0)
        if include_alpha:
            W = alpha * W
    else:
        pw = base[:, None, None] ** jm_pos[None]
        pw = jnp.where(jm_pos[None] == 0.0, 1.0, pw)
        W = jnp.where(mask[None], pw, 0.0)
        if include_alpha:
            W = alpha[:, None, None] * W
    return W.astype(jnp.float32)


# ----------------------------------------------------------------------------
# The fused kernel (one grid step == one batch element, everything VMEM-resident)
# ----------------------------------------------------------------------------

def _etsformer_kernel(L, H, K, n_ff, T, *refs):
    it = iter(refs)
    xcol_ref = next(it); x_ref = next(it)
    ew_ref = next(it); eb_ref = next(it)
    FW_ref = next(it); INV_ref = next(it)
    win_ref = next(it); bin_ref = next(it)
    wout_ref = next(it); bout_ref = next(it)
    init_ref = next(it); Wh_ref = next(it); add_ref = next(it)
    W1_ref = next(it); W2_ref = next(it)
    wg_ref = next(it); bg_ref = next(it)
    ws_ref = next(it); bs_ref = next(it)
    if n_ff > 0:
        g1_ref = next(it); b1n_ref = next(it)
        w1_ref = next(it); b1_ref = next(it)
        w2_ref = next(it); b2_ref = next(it)
        g2_ref = next(it); b2n_ref = next(it)
    if T > 0:
        Et_ref = next(it); dampd_ref = next(it)
        ltw_ref = next(it); ltb_ref = next(it)
        fc_ref = next(it)
    else:
        lg_out = next(it); ls_out = next(it); xl_out = next(it)
    sm_ref = next(it)                                        # VMEM scratch (n, d)

    f32 = jnp.float32
    n, d = sm_ref.shape
    F = FW_ref.shape[0] // 2
    dh = d // H
    kk = min(K, F)

    # ----- input embedding: single im2col matmul -----------------------------------
    z = jnp.dot(xcol_ref[...], ew_ref[...], preferred_element_type=f32) + eb_ref[...]  # (n, d)
    xl = x_ref[...]                                          # (n, tf) level stream

    if T > 0:
        ssum = jnp.zeros((n, d), f32)                        # sum_l seasonal latents
        glast = jnp.zeros((1, d), f32)                       # sum_l growth latents at t = n-1

    for l in range(L):                                       # static unroll over layers
        # ----- FrequencyAttention: rfft -> keep top-K amplitudes -> irfft ----------
        freqs = jnp.dot(FW_ref[...], z, preferred_element_type=f32)       # (2F, d) = [re; im]
        re, im = freqs[:F], freqs[F:]
        power = re * re + im * im                            # monotone in |.|, no sqrt
        # K-pass extraction of the K-th largest power (counting multiplicity) per column.
        row_ids = jax.lax.broadcasted_iota(jnp.int32, power.shape, 0)
        remaining = power
        kth = None
        for _ in range(kk):
            kth = jnp.max(remaining, axis=0, keepdims=True)                # current max
            first = jnp.min(jnp.where(remaining >= kth, row_ids, F),
                            axis=0, keepdims=True)                         # first argmax
            remaining = jnp.where(row_ids == first, -jnp.inf, remaining)   # drop ONE instance
        keep = power >= kth                                  # ties at kth kept (torch semantics)
        masked = jnp.concatenate([jnp.where(keep, re, 0.0),
                                  jnp.where(keep, im, 0.0)], axis=0)       # (2F, d)
        ls = jnp.dot(INV_ref[...], masked, preferred_element_type=f32)     # (n, d)
        z = z - ls

        # ----- MHESA: project_in -> diff vs shifted state -> per-head smoothing ----
        zi = jnp.dot(z, win_ref[l], preferred_element_type=f32) + bin_ref[l]   # (n, d)
        prev = jnp.concatenate([init_ref[l], zi[:-1]], axis=0)
        xdiff = zi - prev
        for hh in range(H):                                  # (n,n)@(n,dh) into scratch slice
            sm_ref[:, hh * dh:(hh + 1) * dh] = jnp.dot(
                Wh_ref[l, hh], xdiff[:, hh * dh:(hh + 1) * dh],
                preferred_element_type=f32)
        smoothed = sm_ref[...] + add_ref[l]
        lg = jnp.dot(smoothed, wout_ref[l], preferred_element_type=f32) + bout_ref[l]
        z = z - lg

        # ----- FeedForwardBlock (all layers but the last) ---------------------------
        if l < n_ff:
            def _ln(v, g, beta):
                mu = jnp.mean(v, axis=-1, keepdims=True)
                var = jnp.mean((v - mu) ** 2, axis=-1, keepdims=True)
                return (v - mu) * jax.lax.rsqrt(var + 1e-5) * g + beta

            x1 = _ln(z, g1_ref[l], b1n_ref[l])
            hmid = jax.nn.sigmoid(jnp.dot(x1, w1_ref[l], preferred_element_type=f32)
                                  + b1_ref[l])
            y = jnp.dot(hmid, w2_ref[l], preferred_element_type=f32) + b2_ref[l]
            z = _ln(x1 + y, g2_ref[l], b2n_ref[l])

        # ----- Level: exponential smoothing of the time-feature stream --------------
        seasonal = jnp.dot(ls, ws_ref[l], preferred_element_type=f32) + bs_ref[l]   # (n, tf)
        growth = jnp.dot(lg, wg_ref[l], preferred_element_type=f32) + bg_ref[l]
        xl = (jnp.dot(W1_ref[l], xl - seasonal, preferred_element_type=f32)
              + jnp.dot(W2_ref[l], growth, preferred_element_type=f32))

        if T > 0:
            ssum = ssum + ls                                 # extrapolation is linear in ls
            glast = glast + lg[n - 1:n, :]                   # dampening uses last time step
        else:
            ls_out[l] = ls
            lg_out[l] = lg

    if T > 0:
        # ----- forecast head: Fourier extrapolation + growth dampening + linear -----
        ext = jnp.dot(Et_ref[...], ssum, preferred_element_type=f32)        # (T, d)
        summed = ext + dampd_ref[...] * glast
        fc = jnp.dot(summed, ltw_ref[...], preferred_element_type=f32) + ltb_ref[...]
        fc_ref[...] = fc + xl[n - 1:n, :]                    # + level stack
    else:
        xl_out[...] = xl


# ----------------------------------------------------------------------------
# BlockSpec helpers
# ----------------------------------------------------------------------------

def _rep_spec(shape):
    """Weight replicated across the batch grid (full-array block, stays VMEM-resident)."""
    nd = len(shape)
    return pl.BlockSpec(tuple(shape), lambda i, nd=nd: (0,) * nd)


def _bat_spec(shape):
    """Per-batch block: leading batch dim squeezed out of the kernel view."""
    nd = len(shape)
    return pl.BlockSpec((None,) + tuple(shape[1:]),
                        lambda i, nd=nd: (i,) + (0,) * (nd - 1))


# ----------------------------------------------------------------------------
# Module forward (jitted; num_steps_forecast / n_heads / K are static)
# ----------------------------------------------------------------------------

def _model_forward(params, x, num_steps_forecast, n_heads, K):
    x = x.astype(jnp.float32)
    b, n, tf = x.shape
    ks, _, d = params['embed_w'].shape
    pad = ks // 2
    T = int(num_steps_forecast)
    layers = params['layers']
    L = len(layers)
    n_ff = sum(1 for lp in layers if lp['ff'] is not None)   # FF exists for layers 0..L-2

    # im2col slab for the 'same' Conv1d embedding (built once in the XLA wrapper)
    xp = jnp.pad(x, ((0, 0), (pad, pad), (0, 0)))
    xcol = jnp.concatenate([xp[:, k:k + n, :] for k in range(ks)], axis=-1)   # (b, n, ks*tf)

    FW, INV = dft_matrices(n)

    # per-layer parameters stacked along a (static) layer axis; tiny smoothing matrices
    # are built here in XLA, no batch broadcast.
    sig = jax.nn.sigmoid
    win = jnp.stack([lp['mh_win'] for lp in layers])                          # (L, d, d)
    bin_ = jnp.stack([lp['mh_bin'].reshape(1, d) for lp in layers])           # (L, 1, d)
    wout = jnp.stack([lp['mh_wout'] for lp in layers])
    bout = jnp.stack([lp['mh_bout'].reshape(1, d) for lp in layers])
    init_ = jnp.stack([lp['mh_init'].reshape(1, d) for lp in layers])         # (L, 1, d)
    Wh = jnp.stack([causal_exp_matrix(sig(lp['mh_alpha']), n, True)
                    for lp in layers])                                        # (L, h, n, n)
    arange1 = jnp.arange(n, dtype=jnp.float32) + 1.0
    add = []
    for lp in layers:
        a = sig(lp['mh_alpha'])                                               # (h,)
        iw = (1.0 - a)[:, None] ** arange1[None, :]                           # (h, n)
        add.append(jnp.transpose(iw[:, :, None] * lp['mh_init'][:, None, :],
                                 (1, 0, 2)).reshape(n, d))
    add = jnp.stack(add)                                                      # (L, n, d)
    W1 = jnp.stack([causal_exp_matrix(sig(lp['lv_alpha']), n, True) for lp in layers])
    W2 = jnp.stack([causal_exp_matrix(sig(lp['lv_alpha']), n, False) for lp in layers])
    wg = jnp.stack([lp['lv_wg'] for lp in layers])
    bg = jnp.stack([lp['lv_bg'].reshape(1, tf) for lp in layers])
    ws = jnp.stack([lp['lv_ws'] for lp in layers])
    bs = jnp.stack([lp['lv_bs'].reshape(1, tf) for lp in layers])

    args = [xcol, x,
            params['embed_w'].reshape(ks * tf, d), params['embed_b'].reshape(1, d),
            FW, INV, win, bin_, wout, bout, init_, Wh, add, W1, W2, wg, bg, ws, bs]
    in_specs = [_bat_spec(xcol.shape), _bat_spec(x.shape)] + \
               [_rep_spec(a.shape) for a in args[2:]]

    if n_ff > 0:
        ffs = [lp['ff'] for lp in layers if lp['ff'] is not None]
        dm4 = ffs[0]['w1'].shape[1]
        ff_args = [jnp.stack([f['g1'].reshape(1, d) for f in ffs]),
                   jnp.stack([f['b1n'].reshape(1, d) for f in ffs]),
                   jnp.stack([f['w1'] for f in ffs]),
                   jnp.stack([f['b1'].reshape(1, dm4) for f in ffs]),
                   jnp.stack([f['w2'] for f in ffs]),
                   jnp.stack([f['b2'].reshape(1, d) for f in ffs]),
                   jnp.stack([f['g2'].reshape(1, d) for f in ffs]),
                   jnp.stack([f['b2n'].reshape(1, d) for f in ffs])]
        args += ff_args
        in_specs += [_rep_spec(a.shape) for a in ff_args]

    if T > 0:
        Et = extrapolation_matrix(n, T)                                      # (T, n)
        df = jax.nn.sigmoid(params['dampen'])                                # (h,)
        powers = jnp.arange(1, T + 1, dtype=jnp.float32)[:, None]
        dampd = jnp.repeat(jnp.cumsum(df[None, :] ** powers, axis=0),
                           d // n_heads, axis=1)                             # (T, d) head-major
        extra = [Et, dampd, params['lt_w'], params['lt_b'].reshape(1, tf)]
        args += extra
        in_specs += [_rep_spec(a.shape) for a in extra]
        out_shape = jax.ShapeDtypeStruct((b, T, tf), jnp.float32)
        out_specs = _bat_spec((b, T, tf))
    else:
        out_shape = (jax.ShapeDtypeStruct((b, L, n, d), jnp.float32),
                     jax.ShapeDtypeStruct((b, L, n, d), jnp.float32),
                     jax.ShapeDtypeStruct((b, n, tf), jnp.float32))
        out_specs = (_bat_spec((b, L, n, d)), _bat_spec((b, L, n, d)),
                     _bat_spec((b, n, tf)))

    out = pl.pallas_call(
        functools.partial(_etsformer_kernel, L, n_heads, K, n_ff, T),
        grid=(b,),
        in_specs=in_specs,
        out_specs=out_specs,
        out_shape=out_shape,
        scratch_shapes=[pltpu.VMEM((n, d), jnp.float32)],
        compiler_params=pltpu.CompilerParams(
            dimension_semantics=("parallel",),          # batch-parallel -> both v7x TCs used
            vmem_limit_bytes=64 * 1024 * 1024),
    )(*args)

    if T > 0:
        return out                                       # (b, T, tf)
    lg, ls, xl = out
    return (jnp.transpose(lg, (0, 2, 1, 3)),             # growth latents   (b, n, L, d)
            jnp.transpose(ls, (0, 2, 1, 3)),             # seasonal latents (b, n, L, d)
            xl)                                          # level output     (b, n, tf)


model_forward = jax.jit(_model_forward, static_argnums=(2, 3, 4))


# ----------------------------------------------------------------------------
# Deterministic parameter init (synthetic; shapes follow the module __init__)
# ----------------------------------------------------------------------------

def init_params(key, d_model, tf, n_heads, e_layers, ksize):
    keys = iter(jax.random.split(key, 128))

    def nrm(shape, scale=0.1):
        return (scale * jax.random.normal(next(keys), shape)).astype(jnp.float32)

    dh = d_model // n_heads
    params = {
        'embed_w': nrm((ksize, tf, d_model)),
        'embed_b': nrm((d_model,)),
        'layers': [],
        'dampen': nrm((n_heads,), 1.0),
        'lt_w': nrm((d_model, tf)),
        'lt_b': nrm((tf,)),
    }
    for ind in range(e_layers):
        lp = {
            'mh_init': nrm((n_heads, dh), 1.0),
            'mh_alpha': nrm((n_heads,), 1.0),
            'mh_win': nrm((d_model, d_model)), 'mh_bin': nrm((d_model,)),
            'mh_wout': nrm((d_model, d_model)), 'mh_bout': nrm((d_model,)),
            'lv_alpha': jnp.zeros((), jnp.float32),
            'lv_wg': nrm((d_model, tf)), 'lv_bg': nrm((tf,)),
            'lv_ws': nrm((d_model, tf)), 'lv_bs': nrm((tf,)),
        }
        if ind != e_layers - 1:
            lp['ff'] = {
                'g1': jnp.ones((d_model,), jnp.float32),
                'b1n': jnp.zeros((d_model,), jnp.float32),
                'w1': nrm((d_model, 4 * d_model)), 'b1': nrm((4 * d_model,)),
                'w2': nrm((4 * d_model, d_model)), 'b2': nrm((d_model,)),
                'g2': jnp.ones((d_model,), jnp.float32),
                'b2n': jnp.zeros((d_model,), jnp.float32),
            }
        else:
            lp['ff'] = None
        params['layers'].append(lp)
    return params


# ----------------------------------------------------------------------------

if __name__ == "__main__":
    B, N, TF = 2, 8, 4            # batch, seq, time_features
    D, H, LAYERS, K, KS = 32, 4, 2, 2, 3
    STEPS = 4

    key = jax.random.PRNGKey(0)
    kx, kp = jax.random.split(key)
    x = jax.random.normal(kx, (B, N, TF), jnp.float32)
    params = init_params(kp, D, TF, H, LAYERS, KS)

    forecasted = model_forward(params, x, STEPS, H, K)     # (B, STEPS, TF)
    latents = model_forward(params, x, 0, H, K)            # (growth, seasonal, level)

    jax.block_until_ready(forecasted)
    jax.block_until_ready(latents)

    assert forecasted.shape == (B, STEPS, TF)
    assert latents[0].shape == (B, N, LAYERS, D)
    assert latents[1].shape == (B, N, LAYERS, D)
    assert latents[2].shape == (B, N, TF)
    print("KERNEL_OK")
</pallas_src>

<mosaic_0001>
module attributes {stable_mosaic.version = 11 : i64} {
  func.func @_etsformer_kernel(%arg0: i32, %arg1: memref<1x8x12xf32, #tpu.memory_space<vmem>>, %arg2: memref<1x8x4xf32, #tpu.memory_space<vmem>>, %arg3: memref<12x32xf32, #tpu.memory_space<vmem>>, %arg4: memref<1x32xf32, #tpu.memory_space<vmem>>, %arg5: memref<10x8xf32, #tpu.memory_space<vmem>>, %arg6: memref<8x10xf32, #tpu.memory_space<vmem>>, %arg7: memref<2x32x32xf32, #tpu.memory_space<vmem>>, %arg8: memref<2x1x32xf32, #tpu.memory_space<vmem>>, %arg9: memref<2x32x32xf32, #tpu.memory_space<vmem>>, %arg10: memref<2x1x32xf32, #tpu.memory_space<vmem>>, %arg11: memref<2x1x32xf32, #tpu.memory_space<vmem>>, %arg12: memref<2x4x8x8xf32, #tpu.memory_space<vmem>>, %arg13: memref<2x8x32xf32, #tpu.memory_space<vmem>>, %arg14: memref<2x8x8xf32, #tpu.memory_space<vmem>>, %arg15: memref<2x8x8xf32, #tpu.memory_space<vmem>>, %arg16: memref<2x32x4xf32, #tpu.memory_space<vmem>>, %arg17: memref<2x1x4xf32, #tpu.memory_space<vmem>>, %arg18: memref<2x32x4xf32, #tpu.memory_space<vmem>>, %arg19: memref<2x1x4xf32, #tpu.memory_space<vmem>>, %arg20: memref<1x1x32xf32, #tpu.memory_space<vmem>>, %arg21: memref<1x1x32xf32, #tpu.memory_space<vmem>>, %arg22: memref<1x32x128xf32, #tpu.memory_space<vmem>>, %arg23: memref<1x1x128xf32, #tpu.memory_space<vmem>>, %arg24: memref<1x128x32xf32, #tpu.memory_space<vmem>>, %arg25: memref<1x1x32xf32, #tpu.memory_space<vmem>>, %arg26: memref<1x1x32xf32, #tpu.memory_space<vmem>>, %arg27: memref<1x1x32xf32, #tpu.memory_space<vmem>>, %arg28: memref<4x8xf32, #tpu.memory_space<vmem>>, %arg29: memref<4x32xf32, #tpu.memory_space<vmem>>, %arg30: memref<32x4xf32, #tpu.memory_space<vmem>>, %arg31: memref<1x4xf32, #tpu.memory_space<vmem>>, %arg32: memref<1x4x4xf32, #tpu.memory_space<vmem>>, %arg33: memref<8x32xf32, #tpu.memory_space<vmem>>) attributes {dimension_semantics = [#tpu.dimension_semantics<parallel>], iteration_bounds = array<i64: 2>, scalar_prefetch = 0 : i64, scratch_operands = 1 : i64, tpu.core_type = #tpu.core_type<tc>, window_params = [{transform_indices = @transform_0, window_bounds = array<i64: 1, 8, 12>}, {transform_indices = @transform_1, window_bounds = array<i64: 1, 8, 4>}, {pipeline_mode = #tpu.pipeline_mode<synchronous>, transform_indices = @transform_2, window_bounds = array<i64: 12, 32>}, {pipeline_mode = #tpu.pipeline_mode<synchronous>, transform_indices = @transform_3, window_bounds = array<i64: 1, 32>}, {pipeline_mode = #tpu.pipeline_mode<synchronous>, transform_indices = @transform_4, window_bounds = array<i64: 10, 8>}, {pipeline_mode = #tpu.pipeline_mode<synchronous>, transform_indices = @transform_5, window_bounds = array<i64: 8, 10>}, {pipeline_mode = #tpu.pipeline_mode<synchronous>, transform_indices = @transform_6, window_bounds = array<i64: 2, 32, 32>}, {pipeline_mode = #tpu.pipeline_mode<synchronous>, transform_indices = @transform_7, window_bounds = array<i64: 2, 1, 32>}, {pipeline_mode = #tpu.pipeline_mode<synchronous>, transform_indices = @transform_8, window_bounds = array<i64: 2, 32, 32>}, {pipeline_mode = #tpu.pipeline_mode<synchronous>, transform_indices = @transform_9, window_bounds = array<i64: 2, 1, 32>}, {pipeline_mode = #tpu.pipeline_mode<synchronous>, transform_indices = @transform_10, window_bounds = array<i64: 2, 1, 32>}, {pipeline_mode = #tpu.pipeline_mode<synchronous>, transform_indices = @transform_11, window_bounds = array<i64: 2, 4, 8, 8>}, {pipeline_mode = #tpu.pipeline_mode<synchronous>, transform_indices = @transform_12, window_bounds = array<i64: 2, 8, 32>}, {pipeline_mode = #tpu.pipeline_mode<synchronous>, transform_indices = @transform_13, window_bounds = array<i64: 2, 8, 8>}, {pipeline_mode = #tpu.pipeline_mode<synchronous>, transform_indices = @transform_14, window_bounds = array<i64: 2, 8, 8>}, {pipeline_mode = #tpu.pipeline_mode<synchronous>, transform_indices = @transform_15, window_bounds = array<i64: 2, 32, 4>}, {pipeline_mode = #tpu.pipeline_mode<synchronous>, transform_indices = @transform_16, window_bounds = array<i64: 2, 1, 4>}, {pipeline_mode = #tpu.pipeline_mode<synchronous>, transform_indices = @transform_17, window_bounds = array<i64: 2, 32, 4>}, {pipeline_mode = #tpu.pipeline_mode<synchronous>, transform_indices = @transform_18, window_bounds = array<i64: 2, 1, 4>}, {pipeline_mode = #tpu.pipeline_mode<synchronous>, transform_indices = @transform_19, window_bounds = array<i64: 1, 1, 32>}, {pipeline_mode = #tpu.pipeline_mode<synchronous>, transform_indices = @transform_20, window_bounds = array<i64: 1, 1, 32>}, {pipeline_mode = #tpu.pipeline_mode<synchronous>, transform_indices = @transform_21, window_bounds = array<i64: 1, 32, 128>}, {pipeline_mode = #tpu.pipeline_mode<synchronous>, transform_indices = @transform_22, window_bounds = array<i64: 1, 1, 128>}, {pipeline_mode = #tpu.pipeline_mode<synchronous>, transform_indices = @transform_23, window_bounds = array<i64: 1, 128, 32>}, {pipeline_mode = #tpu.pipeline_mode<synchronous>, transform_indices = @transform_24, window_bounds = array<i64: 1, 1, 32>}, {pipeline_mode = #tpu.pipeline_mode<synchronous>, transform_indices = @transform_25, window_bounds = array<i64: 1, 1, 32>}, {pipeline_mode = #tpu.pipeline_mode<synchronous>, transform_indices = @transform_26, window_bounds = array<i64: 1, 1, 32>}, {pipeline_mode = #tpu.pipeline_mode<synchronous>, transform_indices = @transform_27, window_bounds = array<i64: 4, 8>}, {pipeline_mode = #tpu.pipeline_mode<synchronous>, transform_indices = @transform_28, window_bounds = array<i64: 4, 32>}, {pipeline_mode = #tpu.pipeline_mode<synchronous>, transform_indices = @transform_29, window_bounds = array<i64: 32, 4>}, {pipeline_mode = #tpu.pipeline_mode<synchronous>, transform_indices = @transform_30, window_bounds = array<i64: 1, 4>}, {transform_indices = @transform_31, window_bounds = array<i64: 1, 4, 4>}]} {
    %c0 = arith.constant 0 : index
    %c0_0 = arith.constant 0 : index
    %c0_1 = arith.constant 0 : index
    %0 = vector.load %arg1[%c0, %c0_0, %c0_1] : memref<1x8x12xf32, #tpu.memory_space<vmem>>, vector<1x8x12xf32>
    %1 = vector.shape_cast %0 : vector<1x8x12xf32> to vector<8x12xf32>
    %c0_2 = arith.constant 0 : index
    %c0_3 = arith.constant 0 : index
    %2 = vector.load %arg3[%c0_2, %c0_3] : memref<12x32xf32, #tpu.memory_space<vmem>>, vector<12x32xf32>
    %cst = arith.constant dense<0.000000e+00> : vector<8x32xf32>
    %3 = tpu.matmul %1, %2, %cst {dimension_numbers = #tpu.dot_dimension_numbers<[1], [0], [0], [1], [0, 0, 1, 1], [], []>} : vector<8x12xf32>, vector<12x32xf32>, vector<8x32xf32> -> vector<8x32xf32>
    %c0_4 = arith.constant 0 : index
    %c0_5 = arith.constant 0 : index
    %4 = vector.load %arg4[%c0_4, %c0_5] : memref<1x32xf32, #tpu.memory_space<vmem>>, vector<1x32xf32>
    %5 = vector.broadcast %4 : vector<1x32xf32> to vector<8x32xf32>
    %6 = arith.addf %3, %5 : vector<8x32xf32>
    %c0_6 = arith.constant 0 : index
    %c0_7 = arith.constant 0 : index
    %c0_8 = arith.constant 0 : index
    %7 = vector.load %arg2[%c0_6, %c0_7, %c0_8] : memref<1x8x4xf32, #tpu.memory_space<vmem>>, vector<1x8x4xf32>
    %8 = vector.shape_cast %7 : vector<1x8x4xf32> to vector<8x4xf32>
    %cst_9 = arith.constant 0.000000e+00 : f32
    %9 = vector.broadcast %cst_9 : f32 to vector<8x32xf32>
    %cst_10 = arith.constant 0.000000e+00 : f32
    %10 = vector.broadcast %cst_10 : f32 to vector<1x32xf32>
    %c0_11 = arith.constant 0 : index
    %c0_12 = arith.constant 0 : index
    %11 = vector.load %arg5[%c0_11, %c0_12] : memref<10x8xf32, #tpu.memory_space<vmem>>, vector<10x8xf32>
    %cst_13 = arith.constant dense<0.000000e+00> : vector<10x32xf32>
    %12 = tpu.matmul %11, %6, %cst_13 {dimension_numbers = #tpu.dot_dimension_numbers<[1], [0], [0], [1], [0, 0, 1, 1], [], []>} : vector<10x8xf32>, vector<8x32xf32>, vector<10x32xf32> -> vector<10x32xf32>
    %13 = vector.extract_strided_slice %12 {offsets = [0, 0], sizes = [5, 32], strides = [1, 1]} : vector<10x32xf32> to vector<5x32xf32>
    %14 = vector.extract_strided_slice %12 {offsets = [5, 0], sizes = [5, 32], strides = [1, 1]} : vector<10x32xf32> to vector<5x32xf32>
    %15 = arith.mulf %13, %13 : vector<5x32xf32>
    %16 = arith.mulf %14, %14 : vector<5x32xf32>
    %17 = arith.addf %15, %16 : vector<5x32xf32>
    %18 = tpu.iota {dimensions = array<i32: 0>} : vector<5x32xi32>
    %cst_14 = arith.constant dense<0xFF800000> : vector<32xf32>
    %19 = vector.multi_reduction <maximumf>, %17, %cst_14 [0] : vector<5x32xf32> to vector<32xf32>
    %20 = vector.shape_cast %19 : vector<32xf32> to vector<1x32xf32>
    %21 = vector.broadcast %20 : vector<1x32xf32> to vector<5x32xf32>
    %22 = arith.cmpf oge, %17, %21 : vector<5x32xf32>
    %c5_i32 = arith.constant 5 : i32
    %23 = vector.broadcast %c5_i32 : i32 to vector<5x32xi32>
    %24 = arith.select %22, %18, %23 : vector<5x32xi1>, vector<5x32xi32>
    %cst_15 = arith.constant dense<2147483647> : vector<32xi32>
    %25 = vector.multi_reduction <minsi>, %24, %cst_15 [0] : vector<5x32xi32> to vector<32xi32>
    %26 = vector.shape_cast %25 : vector<32xi32> to vector<1x32xi32>
    %27 = vector.broadcast %26 : vector<1x32xi32> to vector<5x32xi32>
    %28 = arith.cmpi eq, %18, %27 : vector<5x32xi32>
    %cst_16 = arith.constant 0xFF800000 : f32
    %29 = vector.broadcast %cst_16 : f32 to vector<5x32xf32>
    %30 = arith.select %28, %29, %17 : vector<5x32xi1>, vector<5x32xf32>
    %cst_17 = arith.constant dense<0xFF800000> : vector<32xf32>
    %31 = vector.multi_reduction <maximumf>, %30, %cst_17 [0] : vector<5x32xf32> to vector<32xf32>
    %32 = vector.shape_cast %31 : vector<32xf32> to vector<1x32xf32>
    %33 = vector.broadcast %32 : vector<1x32xf32> to vector<5x32xf32>
    %34 = arith.cmpf oge, %17, %33 : vector<5x32xf32>
    %cst_18 = arith.constant 0.000000e+00 : f32
    %35 = vector.broadcast %cst_18 : f32 to vector<5x32xf32>
    %36 = arith.select %34, %13, %35 : vector<5x32xi1>, vector<5x32xf32>
    %cst_19 = arith.constant 0.000000e+00 : f32
    %37 = vector.broadcast %cst_19 : f32 to vector<5x32xf32>
    %38 = arith.select %34, %14, %37 : vector<5x32xi1>, vector<5x32xf32>
    %39 = tpu.concatenate %36, %38 in 0 : vector<5x32xf32>, vector<5x32xf32> -> vector<10x32xf32>
    %c0_20 = arith.constant 0 : index
    %c0_21 = arith.constant 0 : index
    %40 = vector.load %arg6[%c0_20, %c0_21] : memref<8x10xf32, #tpu.memory_space<vmem>>, vector<8x10xf32>
    %cst_22 = arith.constant dense<0.000000e+00> : vector<8x32xf32>
    %41 = tpu.matmul %40, %39, %cst_22 {dimension_numbers = #tpu.dot_dimension_numbers<[1], [0], [0], [1], [0, 0, 1, 1], [], []>} : vector<8x10xf32>, vector<10x32xf32>, vector<8x32xf32> -> vector<8x32xf32>
    %42 = arith.subf %6, %41 : vector<8x32xf32>
    %c0_23 = arith.constant 0 : index
    %c0_24 = arith.constant 0 : index
    %c0_25 = arith.constant 0 : index
    %43 = vector.load %arg7[%c0_23, %c0_24, %c0_25] : memref<2x32x32xf32, #tpu.memory_space<vmem>>, vector<1x32x32xf32>
    %44 = vector.shape_cast %43 : vector<1x32x32xf32> to vector<32x32xf32>
    %cst_26 = arith.constant dense<0.000000e+00> : vector<8x32xf32>
    %45 = tpu.matmul %42, %44, %cst_26 {dimension_numbers = #tpu.dot_dimension_numbers<[1], [0], [0], [1], [0, 0, 1, 1], [], []>} : vector<8x32xf32>, vector<32x32xf32>, vector<8x32xf32> -> vector<8x32xf32>
    %c0_27 = arith.constant 0 : index
    %c0_28 = arith.constant 0 : index
    %c0_29 = arith.constant 0 : index
    %46 = vector.load %arg8[%c0_27, %c0_28, %c0_29] : memref<2x1x32xf32, #tpu.memory_space<vmem>>, vector<1x1x32xf32>
    %47 = vector.shape_cast %46 : vector<1x1x32xf32> to vector<1x32xf32>
    %48 = vector.broadcast %47 : vector<1x32xf32> to vector<8x32xf32>
    %49 = arith.addf %45, %48 : vector<8x32xf32>
    %c0_30 = arith.constant 0 : index
    %c0_31 = arith.constant 0 : index
    %c0_32 = arith.constant 0 : index
    %50 = vector.load %arg11[%c0_30, %c0_31, %c0_32] : memref<2x1x32xf32, #tpu.memory_space<vmem>>, vector<1x1x32xf32>
    %51 = vector.shape_cast %50 : vector<1x1x32xf32> to vector<1x32xf32>
    %52 = vector.extract_strided_slice %49 {offsets = [0, 0], sizes = [7, 32], strides = [1, 1]} : vector<8x32xf32> to vector<7x32xf32>
    %53 = tpu.concatenate %51, %52 in 0 : vector<1x32xf32>, vector<7x32xf32> -> vector<8x32xf32>
    %54 = arith.subf %49, %53 : vector<8x32xf32>
    %c0_33 = arith.constant 0 : index
    %c0_34 = arith.constant 0 : index
    %c0_35 = arith.constant 0 : index
    %c0_36 = arith.constant 0 : index
    %55 = vector.load %arg12[%c0_33, %c0_34, %c0_35, %c0_36] : memref<2x4x8x8xf32, #tpu.memory_space<vmem>>, vector<1x1x8x8xf32>
    %56 = vector.shape_cast %55 : vector<1x1x8x8xf32> to vector<8x8xf32>
    %57 = vector.extract_strided_slice %54 {offsets = [0, 0], sizes = [8, 8], strides = [1, 1]} : vector<8x32xf32> to vector<8x8xf32>
    %cst_37 = arith.constant dense<0.000000e+00> : vector<8x8xf32>
    %58 = tpu.matmul %56, %57, %cst_37 {dimension_numbers = #tpu.dot_dimension_numbers<[1], [0], [0], [1], [0, 0, 1, 1], [], []>} : vector<8x8xf32>, vector<8x8xf32>, vector<8x8xf32> -> vector<8x8xf32>
    %c0_38 = arith.constant 0 : index
    %c0_39 = arith.constant 0 : index
    %59 = vector.load %arg33[%c0_38, %c0_39] : memref<8x32xf32, #tpu.memory_space<vmem>>, vector<8x8xf32>
    tpu.vector_store %arg33[%c0_38, %c0_39], %58 {strides = array<i32>} : memref<8x32xf32, #tpu.memory_space<vmem>>, vector<8x8xf32>,
    %c0_40 = arith.constant 0 : index
    %c1 = arith.constant 1 : index
    %c0_41 = arith.constant 0 : index
    %c0_42 = arith.constant 0 : index
    %60 = vector.load %arg12[%c0_40, %c1, %c0_41, %c0_42] : memref<2x4x8x8xf32, #tpu.memory_space<vmem>>, vector<1x1x8x8xf32>
    %61 = vector.shape_cast %60 : vector<1x1x8x8xf32> to vector<8x8xf32>
    %62 = vector.extract_strided_slice %54 {offsets = [0, 8], sizes = [8, 8], strides = [1, 1]} : vector<8x32xf32> to vector<8x8xf32>
    %cst_43 = arith.constant dense<0.000000e+00> : vector<8x8xf32>
    %63 = tpu.matmul %61, %62, %cst_43 {dimension_numbers = #tpu.dot_dimension_numbers<[1], [0], [0], [1], [0, 0, 1, 1], [], []>} : vector<8x8xf32>, vector<8x8xf32>, vector<8x8xf32> -> vector<8x8xf32>
    %c0_44 = arith.constant 0 : index
    %c8 = arith.constant 8 : index
    %64 = vector.load %arg33[%c0_44, %c8] : memref<8x32xf32, #tpu.memory_space<vmem>>, vector<8x8xf32>
    tpu.vector_store %arg33[%c0_44, %c8], %63 {strides = array<i32>} : memref<8x32xf32, #tpu.memory_space<vmem>>, vector<8x8xf32>,
    %c0_45 = arith.constant 0 : index
    %c2 = arith.constant 2 : index
    %c0_46 = arith.constant 0 : index
    %c0_47 = arith.constant 0 : index
    %65 = vector.load %arg12[%c0_45, %c2, %c0_46, %c0_47] : memref<2x4x8x8xf32, #tpu.memory_space<vmem>>, vector<1x1x8x8xf32>
    %66 = vector.shape_cast %65 : vector<1x1x8x8xf32> to vector<8x8xf32>
    %67 = vector.extract_strided_slice %54 {offsets = [0, 16], sizes = [8, 8], strides = [1, 1]} : vector<8x32xf32> to vector<8x8xf32>
    %cst_48 = arith.constant dense<0.000000e+00> : vector<8x8xf32>
    %68 = tpu.matmul %66, %67, %cst_48 {dimension_numbers = #tpu.dot_dimension_numbers<[1], [0], [0], [1], [0, 0, 1, 1], [], []>} : vector<8x8xf32>, vector<8x8xf32>, vector<8x8xf32> -> vector<8x8xf32>
    %c0_49 = arith.constant 0 : index
    %c16 = arith.constant 16 : index
    %69 = vector.load %arg33[%c0_49, %c16] : memref<8x32xf32, #tpu.memory_space<vmem>>, vector<8x8xf32>
    tpu.vector_store %arg33[%c0_49, %c16], %68 {strides = array<i32>} : memref<8x32xf32, #tpu.memory_space<vmem>>, vector<8x8xf32>,
    %c0_50 = arith.constant 0 : index
    %c3 = arith.constant 3 : index
    %c0_51 = arith.constant 0 : index
    %c0_52 = arith.constant 0 : index
    %70 = vector.load %arg12[%c0_50, %c3, %c0_51, %c0_52] : memref<2x4x8x8xf32, #tpu.memory_space<vmem>>, vector<1x1x8x8xf32>
    %71 = vector.shape_cast %70 : vector<1x1x8x8xf32> to vector<8x8xf32>
    %72 = vector.extract_strided_slice %54 {offsets = [0, 24], sizes = [8, 8], strides = [1, 1]} : vector<8x32xf32> to vector<8x8xf32>
    %cst_53 = arith.constant dense<0.000000e+00> : vector<8x8xf32>
    %73 = tpu.matmul %71, %72, %cst_53 {dimension_numbers = #tpu.dot_dimension_numbers<[1], [0], [0], [1], [0, 0, 1, 1], [], []>} : vector<8x8xf32>, vector<8x8xf32>, vector<8x8xf32> -> vector<8x8xf32>
    %c0_54 = arith.constant 0 : index
    %c24 = arith.constant 24 : index
    %74 = vector.load %arg33[%c0_54, %c24] : memref<8x32xf32, #tpu.memory_space<vmem>>, vector<8x8xf32>
    tpu.vector_store %arg33[%c0_54, %c24], %73 {strides = array<i32>} : memref<8x32xf32, #tpu.memory_space<vmem>>, vector<8x8xf32>,
    %c0_55 = arith.constant 0 : index
    %c0_56 = arith.constant 0 : index
    %75 = vector.load %arg33[%c0_55, %c0_56] : memref<8x32xf32, #tpu.memory_space<vmem>>, vector<8x32xf32>
    %c0_57 = arith.constant 0 : index
    %c0_58 = arith.constant 0 : index
    %c0_59 = arith.constant 0 : index
    %76 = vector.load %arg13[%c0_57, %c0_58, %c0_59] : memref<2x8x32xf32, #tpu.memory_space<vmem>>, vector<1x8x32xf32>
    %77 = vector.shape_cast %76 : vector<1x8x32xf32> to vector<8x32xf32>
    %78 = arith.addf %75, %77 : vector<8x32xf32>
    %c0_60 = arith.constant 0 : index
    %c0_61 = arith.constant 0 : index
    %c0_62 = arith.constant 0 : index
    %79 = vector.load %arg9[%c0_60, %c0_61, %c0_62] : memref<2x32x32xf32, #tpu.memory_space<vmem>>, vector<1x32x32xf32>
    %80 = vector.shape_cast %79 : vector<1x32x32xf32> to vector<32x32xf32>
    %cst_63 = arith.constant dense<0.000000e+00> : vector<8x32xf32>
    %81 = tpu.matmul %78, %80, %cst_63 {dimension_numbers = #tpu.dot_dimension_numbers<[1], [0], [0], [1], [0, 0, 1, 1], [], []>} : vector<8x32xf32>, vector<32x32xf32>, vector<8x32xf32> -> vector<8x32xf32>
    %c0_64 = arith.constant 0 : index
    %c0_65 = arith.constant 0 : index
    %c0_66 = arith.constant 0 : index
    %82 = vector.load %arg10[%c0_64, %c0_65, %c0_66] : memref<2x1x32xf32, #tpu.memory_space<vmem>>, vector<1x1x32xf32>
    %83 = vector.shape_cast %82 : vector<1x1x32xf32> to vector<1x32xf32>
    %84 = vector.broadcast %83 : vector<1x32xf32> to vector<8x32xf32>
    %85 = arith.addf %81, %84 : vector<8x32xf32>
    %86 = arith.subf %42, %85 : vector<8x32xf32>
    %c0_67 = arith.constant 0 : index
    %c0_68 = arith.constant 0 : index
    %c0_69 = arith.constant 0 : index
    %87 = vector.load %arg20[%c0_67, %c0_68, %c0_69] : memref<1x1x32xf32, #tpu.memory_space<vmem>>, vector<1x1x32xf32>
    %88 = vector.shape_cast %87 : vector<1x1x32xf32> to vector<1x32xf32>
    %c0_70 = arith.constant 0 : index
    %c0_71 = arith.constant 0 : index
    %c0_72 = arith.constant 0 : index
    %89 = vector.load %arg21[%c0_70, %c0_71, %c0_72] : memref<1x1x32xf32, #tpu.memory_space<vmem>>, vector<1x1x32xf32>
    %90 = vector.shape_cast %89 : vector<1x1x32xf32> to vector<1x32xf32>
    %cst_73 = arith.constant dense<0.000000e+00> : vector<8xf32>
    %91 = vector.multi_reduction <add>, %86, %cst_73 [1] : vector<8x32xf32> to vector<8xf32>
    %92 = vector.shape_cast %91 : vector<8xf32> to vector<8x1xf32>
    %cst_74 = arith.constant 3.200000e+01 : f32
    %93 = vector.broadcast %cst_74 : f32 to vector<8x1xf32>
    %94 = arith.divf %92, %93 : vector<8x1xf32>
    %95 = vector.broadcast %94 : vector<8x1xf32> to vector<8x32xf32>
    %96 = arith.subf %86, %95 : vector<8x32xf32>
    %97 = arith.mulf %96, %96 : vector<8x32xf32>
    %cst_75 = arith.constant dense<0.000000e+00> : vector<8xf32>
    %98 = vector.multi_reduction <add>, %97, %cst_75 [1] : vector<8x32xf32> to vector<8xf32>
    %99 = vector.shape_cast %98 : vector<8xf32> to vector<8x1xf32>
    %cst_76 = arith.constant 3.200000e+01 : f32
    %100 = vector.broadcast %cst_76 : f32 to vector<8x1xf32>
    %101 = arith.divf %99, %100 : vector<8x1xf32>
    %102 = vector.broadcast %94 : vector<8x1xf32> to vector<8x32xf32>
    %103 = arith.subf %86, %102 : vector<8x32xf32>
    %cst_77 = arith.constant 9.99999974E-6 : f32
    %104 = vector.broadcast %cst_77 : f32 to vector<8x1xf32>
    %105 = arith.addf %101, %104 : vector<8x1xf32>
    %106 = math.rsqrt %105 : vector<8x1xf32>
    %107 = vector.broadcast %106 : vector<8x1xf32> to vector<8x32xf32>
    %108 = arith.mulf %103, %107 : vector<8x32xf32>
    %109 = vector.broadcast %88 : vector<1x32xf32> to vector<8x32xf32>
    %110 = arith.mulf %108, %109 : vector<8x32xf32>
    %111 = vector.broadcast %90 : vector<1x32xf32> to vector<8x32xf32>
    %112 = arith.addf %110, %111 : vector<8x32xf32>
    %c0_78 = arith.constant 0 : index
    %c0_79 = arith.constant 0 : index
    %c0_80 = arith.constant 0 : index
    %113 = vector.load %arg22[%c0_78, %c0_79, %c0_80] : memref<1x32x128xf32, #tpu.memory_space<vmem>>, vector<1x32x128xf32>
    %114 = vector.shape_cast %113 : vector<1x32x128xf32> to vector<32x128xf32>
    %cst_81 = arith.constant dense<0.000000e+00> : vector<8x128xf32>
    %115 = tpu.matmul %112, %114, %cst_81 {dimension_numbers = #tpu.dot_dimension_numbers<[1], [0], [0], [1], [0, 0, 1, 1], [], []>} : vector<8x32xf32>, vector<32x128xf32>, vector<8x128xf32> -> vector<8x128xf32>
    %c0_82 = arith.constant 0 : index
    %c0_83 = arith.constant 0 : index
    %c0_84 = arith.constant 0 : index
    %116 = vector.load %arg23[%c0_82, %c0_83, %c0_84] : memref<1x1x128xf32, #tpu.memory_space<vmem>>, vector<1x1x128xf32>
    %117 = vector.shape_cast %116 : vector<1x1x128xf32> to vector<1x128xf32>
    %118 = vector.broadcast %117 : vector<1x128xf32> to vector<8x128xf32>
    %119 = arith.addf %115, %118 : vector<8x128xf32>
    %120 = arith.negf %119 : vector<8x128xf32>
    %121 = math.exp %120 : vector<8x128xf32>
    %cst_85 = arith.constant 1.000000e+00 : f32
    %122 = vector.broadcast %cst_85 : f32 to vector<8x128xf32>
    %123 = arith.addf %122, %121 : vector<8x128xf32>
    %124 = arith.divf %122, %123 : vector<8x128xf32>
    %c0_86 = arith.constant 0 : index
    %c0_87 = arith.constant 0 : index
    %c0_88 = arith.constant 0 : index
    %125 = vector.load %arg24[%c0_86, %c0_87, %c0_88] : memref<1x128x32xf32, #tpu.memory_space<vmem>>, vector<1x128x32xf32>
    %126 = vector.shape_cast %125 : vector<1x128x32xf32> to vector<128x32xf32>
    %cst_89 = arith.constant dense<0.000000e+00> : vector<8x32xf32>
    %127 = tpu.matmul %124, %126, %cst_89 {dimension_numbers = #tpu.dot_dimension_numbers<[1], [0], [0], [1], [0, 0, 1, 1], [], []>} : vector<8x128xf32>, vector<128x32xf32>, vector<8x32xf32> -> vector<8x32xf32>
    %c0_90 = arith.constant 0 : index
    %c0_91 = arith.constant 0 : index
    %c0_92 = arith.constant 0 : index
    %128 = vector.load %arg25[%c0_90, %c0_91, %c0_92] : memref<1x1x32xf32, #tpu.memory_space<vmem>>, vector<1x1x32xf32>
    %129 = vector.shape_cast %128 : vector<1x1x32xf32> to vector<1x32xf32>
    %130 = vector.broadcast %129 : vector<1x32xf32> to vector<8x32xf32>
    %131 = arith.addf %127, %130 : vector<8x32xf32>
    %132 = arith.addf %112, %131 : vector<8x32xf32>
    %c0_93 = arith.constant 0 : index
    %c0_94 = arith.constant 0 : index
    %c0_95 = arith.constant 0 : index
    %133 = vector.load %arg26[%c0_93, %c0_94, %c0_95] : memref<1x1x32xf32, #tpu.memory_space<vmem>>, vector<1x1x32xf32>
    %134 = vector.shape_cast %133 : vector<1x1x32xf32> to vector<1x32xf32>
    %c0_96 = arith.constant 0 : index
    %c0_97 = arith.constant 0 : index
    %c0_98 = arith.constant 0 : index
    %135 = vector.load %arg27[%c0_96, %c0_97, %c0_98] : memref<1x1x32xf32, #tpu.memory_space<vmem>>, vector<1x1x32xf32>
    %136 = vector.shape_cast %135 : vector<1x1x32xf32> to vector<1x32xf32>
    %cst_99 = arith.constant dense<0.000000e+00> : vector<8xf32>
    %137 = vector.multi_reduction <add>, %132, %cst_99 [1] : vector<8x32xf32> to vector<8xf32>
    %138 = vector.shape_cast %137 : vector<8xf32> to vector<8x1xf32>
    %cst_100 = arith.constant 3.200000e+01 : f32
    %139 = vector.broadcast %cst_100 : f32 to vector<8x1xf32>
    %140 = arith.divf %138, %139 : vector<8x1xf32>
    %141 = vector.broadcast %140 : vector<8x1xf32> to vector<8x32xf32>
    %142 = arith.subf %132, %141 : vector<8x32xf32>
    %143 = arith.mulf %142, %142 : vector<8x32xf32>
    %cst_101 = arith.constant dense<0.000000e+00> : vector<8xf32>
    %144 = vector.multi_reduction <add>, %143, %cst_101 [1] : vector<8x32xf32> to vector<8xf32>
    %145 = vector.shape_cast %144 : vector<8xf32> to vector<8x1xf32>
    %cst_102 = arith.constant 3.200000e+01 : f32
    %146 = vector.broadcast %cst_102 : f32 to vector<8x1xf32>
    %147 = arith.divf %145, %146 : vector<8x1xf32>
    %148 = vector.broadcast %140 : vector<8x1xf32> to vector<8x32xf32>
    %149 = arith.subf %132, %148 : vector<8x32xf32>
    %cst_103 = arith.constant 9.99999974E-6 : f32
    %150 = vector.broadcast %cst_103 : f32 to vector<8x1xf32>
    %151 = arith.addf %147, %150 : vector<8x1xf32>
    %152 = math.rsqrt %151 : vector<8x1xf32>
    %153 = vector.broadcast %152 : vector<8x1xf32> to vector<8x32xf32>
    %154 = arith.mulf %149, %153 : vector<8x32xf32>
    %155 = vector.broadcast %134 : vector<1x32xf32> to vector<8x32xf32>
    %156 = arith.mulf %154, %155 : vector<8x32xf32>
    %157 = vector.broadcast %136 : vector<1x32xf32> to vector<8x32xf32>
    %158 = arith.addf %156, %157 : vector<8x32xf32>
    %c0_104 = arith.constant 0 : index
    %c0_105 = arith.constant 0 : index
    %c0_106 = arith.constant 0 : index
    %159 = vector.load %arg18[%c0_104, %c0_105, %c0_106] : memref<2x32x4xf32, #tpu.memory_space<vmem>>, vector<1x32x4xf32>
    %160 = vector.shape_cast %159 : vector<1x32x4xf32> to vector<32x4xf32>
    %cst_107 = arith.constant dense<0.000000e+00> : vector<8x4xf32>
    %161 = tpu.matmul %41, %160, %cst_107 {dimension_numbers = #tpu.dot_dimension_numbers<[1], [0], [0], [1], [0, 0, 1, 1], [], []>} : vector<8x32xf32>, vector<32x4xf32>, vector<8x4xf32> -> vector<8x4xf32>
    %c0_108 = arith.constant 0 : index
    %c0_109 = arith.constant 0 : index
    %c0_110 = arith.constant 0 : index
    %162 = vector.load %arg19[%c0_108, %c0_109, %c0_110] : memref<2x1x4xf32, #tpu.memory_space<vmem>>, vector<1x1x4xf32>
    %163 = vector.shape_cast %162 : vector<1x1x4xf32> to vector<1x4xf32>
    %164 = vector.broadcast %163 : vector<1x4xf32> to vector<8x4xf32>
    %165 = arith.addf %161, %164 : vector<8x4xf32>
    %c0_111 = arith.constant 0 : index
    %c0_112 = arith.constant 0 : index
    %c0_113 = arith.constant 0 : index
    %166 = vector.load %arg16[%c0_111, %c0_112, %c0_113] : memref<2x32x4xf32, #tpu.memory_space<vmem>>, vector<1x32x4xf32>
    %167 = vector.shape_cast %166 : vector<1x32x4xf32> to vector<32x4xf32>
    %cst_114 = arith.constant dense<0.000000e+00> : vector<8x4xf32>
    %168 = tpu.matmul %85, %167, %cst_114 {dimension_numbers = #tpu.dot_dimension_numbers<[1], [0], [0], [1], [0, 0, 1, 1], [], []>} : vector<8x32xf32>, vector<32x4xf32>, vector<8x4xf32> -> vector<8x4xf32>
    %c0_115 = arith.constant 0 : index
    %c0_116 = arith.constant 0 : index
    %c0_117 = arith.constant 0 : index
    %169 = vector.load %arg17[%c0_115, %c0_116, %c0_117] : memref<2x1x4xf32, #tpu.memory_space<vmem>>, vector<1x1x4xf32>
    %170 = vector.shape_cast %169 : vector<1x1x4xf32> to vector<1x4xf32>
    %171 = vector.broadcast %170 : vector<1x4xf32> to vector<8x4xf32>
    %172 = arith.addf %168, %171 : vector<8x4xf32>
    %c0_118 = arith.constant 0 : index
    %c0_119 = arith.constant 0 : index
    %c0_120 = arith.constant 0 : index
    %173 = vector.load %arg14[%c0_118, %c0_119, %c0_120] : memref<2x8x8xf32, #tpu.memory_space<vmem>>, vector<1x8x8xf32>
    %174 = vector.shape_cast %173 : vector<1x8x8xf32> to vector<8x8xf32>
    %175 = arith.subf %8, %165 : vector<8x4xf32>
    %cst_121 = arith.constant dense<0.000000e+00> : vector<8x4xf32>
    %176 = tpu.matmul %174, %175, %cst_121 {dimension_numbers = #tpu.dot_dimension_numbers<[1], [0], [0], [1], [0, 0, 1, 1], [], []>} : vector<8x8xf32>, vector<8x4xf32>, vector<8x4xf32> -> vector<8x4xf32>
    %c0_122 = arith.constant 0 : index
    %c0_123 = arith.constant 0 : index
    %c0_124 = arith.constant 0 : index
    %177 = vector.load %arg15[%c0_122, %c0_123, %c0_124] : memref<2x8x8xf32, #tpu.memory_space<vmem>>, vector<1x8x8xf32>
    %178 = vector.shape_cast %177 : vector<1x8x8xf32> to vector<8x8xf32>
    %cst_125 = arith.constant dense<0.000000e+00> : vector<8x4xf32>
    %179 = tpu.matmul %178, %172, %cst_125 {dimension_numbers = #tpu.dot_dimension_numbers<[1], [0], [0], [1], [0, 0, 1, 1], [], []>} : vector<8x8xf32>, vector<8x4xf32>, vector<8x4xf32> -> vector<8x4xf32>
    %180 = arith.addf %176, %179 : vector<8x4xf32>
    %181 = arith.addf %9, %41 : vector<8x32xf32>
    %182 = vector.extract_strided_slice %85 {offsets = [7, 0], sizes = [1, 32], strides = [1, 1]} : vector<8x32xf32> to vector<1x32xf32>
    %183 = arith.addf %10, %182 : vector<1x32xf32>
    %c0_126 = arith.constant 0 : index
    %c0_127 = arith.constant 0 : index
    %184 = vector.load %arg5[%c0_126, %c0_127] : memref<10x8xf32, #tpu.memory_space<vmem>>, vector<10x8xf32>
    %cst_128 = arith.constant dense<0.000000e+00> : vector<10x32xf32>
    %185 = tpu.matmul %184, %158, %cst_128 {dimension_numbers = #tpu.dot_dimension_numbers<[1], [0], [0], [1], [0, 0, 1, 1], [], []>} : vector<10x8xf32>, vector<8x32xf32>, vector<10x32xf32> -> vector<10x32xf32>
    %186 = vector.extract_strided_slice %185 {offsets = [0, 0], sizes = [5, 32], strides = [1, 1]} : vector<10x32xf32> to vector<5x32xf32>
    %187 = vector.extract_strided_slice %185 {offsets = [5, 0], sizes = [5, 32], strides = [1, 1]} : vector<10x32xf32> to vector<5x32xf32>
    %188 = arith.mulf %186, %186 : vector<5x32xf32>
    %189 = arith.mulf %187, %187 : vector<5x32xf32>
    %190 = arith.addf %188, %189 : vector<5x32xf32>
    %191 = tpu.iota {dimensions = array<i32: 0>} : vector<5x32xi32>
    %cst_129 = arith.constant dense<0xFF800000> : vector<32xf32>
    %192 = vector.multi_reduction <maximumf>, %190, %cst_129 [0] : vector<5x32xf32> to vector<32xf32>
    %193 = vector.shape_cast %192 : vector<32xf32> to vector<1x32xf32>
    %194 = vector.broadcast %193 : vector<1x32xf32> to vector<5x32xf32>
    %195 = arith.cmpf oge, %190, %194 : vector<5x32xf32>
    %c5_i32_130 = arith.constant 5 : i32
    %196 = vector.broadcast %c5_i32_130 : i32 to vector<5x32xi32>
    %197 = arith.select %195, %191, %196 : vector<5x32xi1>, vector<5x32xi32>
    %cst_131 = arith.constant dense<2147483647> : vector<32xi32>
    %198 = vector.multi_reduction <minsi>, %197, %cst_131 [0] : vector<5x32xi32> to vector<32xi32>
    %199 = vector.shape_cast %198 : vector<32xi32> to vector<1x32xi32>
    %200 = vector.broadcast %199 : vector<1x32xi32> to vector<5x32xi32>
    %201 = arith.cmpi eq, %191, %200 : vector<5x32xi32>
    %cst_132 = arith.constant 0xFF800000 : f32
    %202 = vector.broadcast %cst_132 : f32 to vector<5x32xf32>
    %203 = arith.select %201, %202, %190 : vector<5x32xi1>, vector<5x32xf32>
    %cst_133 = arith.constant dense<0xFF800000> : vector<32xf32>
    %204 = vector.multi_reduction <maximumf>, %203, %cst_133 [0] : vector<5x32xf32> to vector<32xf32>
    %205 = vector.shape_cast %204 : vector<32xf32> to vector<1x32xf32>
    %206 = vector.broadcast %205 : vector<1x32xf32> to vector<5x32xf32>
    %207 = arith.cmpf oge, %190, %206 : vector<5x32xf32>
    %cst_134 = arith.constant 0.000000e+00 : f32
    %208 = vector.broadcast %cst_134 : f32 to vector<5x32xf32>
    %209 = arith.select %207, %186, %208 : vector<5x32xi1>, vector<5x32xf32>
    %cst_135 = arith.constant 0.000000e+00 : f32
    %210 = vector.broadcast %cst_135 : f32 to vector<5x32xf32>
    %211 = arith.select %207, %187, %210 : vector<5x32xi1>, vector<5x32xf32>
    %212 = tpu.concatenate %209, %211 in 0 : vector<5x32xf32>, vector<5x32xf32> -> vector<10x32xf32>
    %c0_136 = arith.constant 0 : index
    %c0_137 = arith.constant 0 : index
    %213 = vector.load %arg6[%c0_136, %c0_137] : memref<8x10xf32, #tpu.memory_space<vmem>>, vector<8x10xf32>
    %cst_138 = arith.constant dense<0.000000e+00> : vector<8x32xf32>
    %214 = tpu.matmul %213, %212, %cst_138 {dimension_numbers = #tpu.dot_dimension_numbers<[1], [0], [0], [1], [0, 0, 1, 1], [], []>} : vector<8x10xf32>, vector<10x32xf32>, vector<8x32xf32> -> vector<8x32xf32>
    %215 = arith.subf %158, %214 : vector<8x32xf32>
    %c1_139 = arith.constant 1 : index
    %c0_140 = arith.constant 0 : index
    %c0_141 = arith.constant 0 : index
    %216 = vector.load %arg7[%c1_139, %c0_140, %c0_141] : memref<2x32x32xf32, #tpu.memory_space<vmem>>, vector<1x32x32xf32>
    %217 = vector.shape_cast %216 : vector<1x32x32xf32> to vector<32x32xf32>
    %cst_142 = arith.constant dense<0.000000e+00> : vector<8x32xf32>
    %218 = tpu.matmul %215, %217, %cst_142 {dimension_numbers = #tpu.dot_dimension_numbers<[1], [0], [0], [1], [0, 0, 1, 1], [], []>} : vector<8x32xf32>, vector<32x32xf32>, vector<8x32xf32> -> vector<8x32xf32>
    %c1_143 = arith.constant 1 : index
    %c0_144 = arith.constant 0 : index
    %c0_145 = arith.constant 0 : index
    %219 = vector.load %arg8[%c1_143, %c0_144, %c0_145] : memref<2x1x32xf32, #tpu.memory_space<vmem>>, vector<1x1x32xf32>
    %220 = vector.shape_cast %219 : vector<1x1x32xf32> to vector<1x32xf32>
    %221 = vector.broadcast %220 : vector<1x32xf32> to vector<8x32xf32>
    %222 = arith.addf %218, %221 : vector<8x32xf32>
    %c1_146 = arith.constant 1 : index
    %c0_147 = arith.constant 0 : index
    %c0_148 = arith.constant 0 : index
    %223 = vector.load %arg11[%c1_146, %c0_147, %c0_148] : memref<2x1x32xf32, #tpu.memory_space<vmem>>, vector<1x1x32xf32>
    %224 = vector.shape_cast %223 : vector<1x1x32xf32> to vector<1x32xf32>
    %225 = vector.extract_strided_slice %222 {offsets = [0, 0], sizes = [7, 32], strides = [1, 1]} : vector<8x32xf32> to vector<7x32xf32>
    %226 = tpu.concatenate %224, %225 in 0 : vector<1x32xf32>, vector<7x32xf32> -> vector<8x32xf32>
    %227 = arith.subf %222, %226 : vector<8x32xf32>
    %c1_149 = arith.constant 1 : index
    %c0_150 = arith.constant 0 : index
    %c0_151 = arith.constant 0 : index
    %c0_152 = arith.constant 0 : index
    %228 = vector.load %arg12[%c1_149, %c0_150, %c0_151, %c0_152] : memref<2x4x8x8xf32, #tpu.memory_space<vmem>>, vector<1x1x8x8xf32>
    %229 = vector.shape_cast %228 : vector<1x1x8x8xf32> to vector<8x8xf32>
    %230 = vector.extract_strided_slice %227 {offsets = [0, 0], sizes = [8, 8], strides = [1, 1]} : vector<8x32xf32> to vector<8x8xf32>
    %cst_153 = arith.constant dense<0.000000e+00> : vector<8x8xf32>
    %231 = tpu.matmul %229, %230, %cst_153 {dimension_numbers = #tpu.dot_dimension_numbers<[1], [0], [0], [1], [0, 0, 1, 1], [], []>} : vector<8x8xf32>, vector<8x8xf32>, vector<8x8xf32> -> vector<8x8xf32>
    %c0_154 = arith.constant 0 : index
    %c0_155 = arith.constant 0 : index
    %232 = vector.load %arg33[%c0_154, %c0_155] : memref<8x32xf32, #tpu.memory_space<vmem>>, vector<8x8xf32>
    tpu.vector_store %arg33[%c0_154, %c0_155], %231 {strides = array<i32>} : memref<8x32xf32, #tpu.memory_space<vmem>>, vector<8x8xf32>,
    %c1_156 = arith.constant 1 : index
    %c1_157 = arith.constant 1 : index
    %c0_158 = arith.constant 0 : index
    %c0_159 = arith.constant 0 : index
    %233 = vector.load %arg12[%c1_156, %c1_157, %c0_158, %c0_159] : memref<2x4x8x8xf32, #tpu.memory_space<vmem>>, vector<1x1x8x8xf32>
    %234 = vector.shape_cast %233 : vector<1x1x8x8xf32> to vector<8x8xf32>
    %235 = vector.extract_strided_slice %227 {offsets = [0, 8], sizes = [8, 8], strides = [1, 1]} : vector<8x32xf32> to vector<8x8xf32>
    %cst_160 = arith.constant dense<0.000000e+00> : vector<8x8xf32>
    %236 = tpu.matmul %234, %235, %cst_160 {dimension_numbers = #tpu.dot_dimension_numbers<[1], [0], [0], [1], [0, 0, 1, 1], [], []>} : vector<8x8xf32>, vector<8x8xf32>, vector<8x8xf32> -> vector<8x8xf32>
    %c0_161 = arith.constant 0 : index
    %c8_162 = arith.constant 8 : index
    %237 = vector.load %arg33[%c0_161, %c8_162] : memref<8x32xf32, #tpu.memory_space<vmem>>, vector<8x8xf32>
    tpu.vector_store %arg33[%c0_161, %c8_162], %236 {strides = array<i32>} : memref<8x32xf32, #tpu.memory_space<vmem>>, vector<8x8xf32>,
    %c1_163 = arith.constant 1 : index
    %c2_164 = arith.constant 2 : index
    %c0_165 = arith.constant 0 : index
    %c0_166 = arith.constant 0 : index
    %238 = vector.load %arg12[%c1_163, %c2_164, %c0_165, %c0_166] : memref<2x4x8x8xf32, #tpu.memory_space<vmem>>, vector<1x1x8x8xf32>
    %239 = vector.shape_cast %238 : vector<1x1x8x8xf32> to vector<8x8xf32>
    %240 = vector.extract_strided_slice %227 {offsets = [0, 16], sizes = [8, 8], strides = [1, 1]} : vector<8x32xf32> to vector<8x8xf32>
    %cst_167 = arith.constant dense<0.000000e+00> : vector<8x8xf32>
    %241 = tpu.matmul %239, %240, %cst_167 {dimension_numbers = #tpu.dot_dimension_numbers<[1], [0], [0], [1], [0, 0, 1, 1], [], []>} : vector<8x8xf32>, vector<8x8xf32>, vector<8x8xf32> -> vector<8x8xf32>
    %c0_168 = arith.constant 0 : index
    %c16_169 = arith.constant 16 : index
    %242 = vector.load %arg33[%c0_168, %c16_169] : memref<8x32xf32, #tpu.memory_space<vmem>>, vector<8x8xf32>
    tpu.vector_store %arg33[%c0_168, %c16_169], %241 {strides = array<i32>} : memref<8x32xf32, #tpu.memory_space<vmem>>, vector<8x8xf32>,
    %c1_170 = arith.constant 1 : index
    %c3_171 = arith.constant 3 : index
    %c0_172 = arith.constant 0 : index
    %c0_173 = arith.constant 0 : index
    %243 = vector.load %arg12[%c1_170, %c3_171, %c0_172, %c0_173] : memref<2x4x8x8xf32, #tpu.memory_space<vmem>>, vector<1x1x8x8xf32>
    %244 = vector.shape_cast %243 : vector<1x1x8x8xf32> to vector<8x8xf32>
    %245 = vector.extract_strided_slice %227 {offsets = [0, 24], sizes = [8, 8], strides = [1, 1]} : vector<8x32xf32> to vector<8x8xf32>
    %cst_174 = arith.constant dense<0.000000e+00> : vector<8x8xf32>
    %246 = tpu.matmul %244, %245, %cst_174 {dimension_numbers = #tpu.dot_dimension_numbers<[1], [0], [0], [1], [0, 0, 1, 1], [], []>} : vector<8x8xf32>, vector<8x8xf32>, vector<8x8xf32> -> vector<8x8xf32>
    %c0_175 = arith.constant 0 : index
    %c24_176 = arith.constant 24 : index
    %247 = vector.load %arg33[%c0_175, %c24_176] : memref<8x32xf32, #tpu.memory_space<vmem>>, vector<8x8xf32>
    tpu.vector_store %arg33[%c0_175, %c24_176], %246 {strides = array<i32>} : memref<8x32xf32, #tpu.memory_space<vmem>>, vector<8x8xf32>,
    %c0_177 = arith.constant 0 : index
    %c0_178 = arith.constant 0 : index
    %248 = vector.load %arg33[%c0_177, %c0_178] : memref<8x32xf32, #tpu.memory_space<vmem>>, vector<8x32xf32>
    %c1_179 = arith.constant 1 : index
    %c0_180 = arith.constant 0 : index
    %c0_181 = arith.constant 0 : index
    %249 = vector.load %arg13[%c1_179, %c0_180, %c0_181] : memref<2x8x32xf32, #tpu.memory_space<vmem>>, vector<1x8x32xf32>
    %250 = vector.shape_cast %249 : vector<1x8x32xf32> to vector<8x32xf32>
    %251 = arith.addf %248, %250 : vector<8x32xf32>
    %c1_182 = arith.constant 1 : index
    %c0_183 = arith.constant 0 : index
    %c0_184 = arith.constant 0 : index
    %252 = vector.load %arg9[%c1_182, %c0_183, %c0_184] : memref<2x32x32xf32, #tpu.memory_space<vmem>>, vector<1x32x32xf32>
    %253 = vector.shape_cast %252 : vector<1x32x32xf32> to vector<32x32xf32>
    %cst_185 = arith.constant dense<0.000000e+00> : vector<8x32xf32>
    %254 = tpu.matmul %251, %253, %cst_185 {dimension_numbers = #tpu.dot_dimension_numbers<[1], [0], [0], [1], [0, 0, 1, 1], [], []>} : vector<8x32xf32>, vector<32x32xf32>, vector<8x32xf32> -> vector<8x32xf32>
    %c1_186 = arith.constant 1 : index
    %c0_187 = arith.constant 0 : index
    %c0_188 = arith.constant 0 : index
    %255 = vector.load %arg10[%c1_186, %c0_187, %c0_188] : memref<2x1x32xf32, #tpu.memory_space<vmem>>, vector<1x1x32xf32>
    %256 = vector.shape_cast %255 : vector<1x1x32xf32> to vector<1x32xf32>
    %257 = vector.broadcast %256 : vector<1x32xf32> to vector<8x32xf32>
    %258 = arith.addf %254, %257 : vector<8x32xf32>
    %c1_189 = arith.constant 1 : index
    %c0_190 = arith.constant 0 : index
    %c0_191 = arith.constant 0 : index
    %259 = vector.load %arg18[%c1_189, %c0_190, %c0_191] : memref<2x32x4xf32, #tpu.memory_space<vmem>>, vector<1x32x4xf32>
    %260 = vector.shape_cast %259 : vector<1x32x4xf32> to vector<32x4xf32>
    %cst_192 = arith.constant dense<0.000000e+00> : vector<8x4xf32>
    %261 = tpu.matmul %214, %260, %cst_192 {dimension_numbers = #tpu.dot_dimension_numbers<[1], [0], [0], [1], [0, 0, 1, 1], [], []>} : vector<8x32xf32>, vector<32x4xf32>, vector<8x4xf32> -> vector<8x4xf32>
    %c1_193 = arith.constant 1 : index
    %c0_194 = arith.constant 0 : index
    %c0_195 = arith.constant 0 : index
    %262 = vector.load %arg19[%c1_193, %c0_194, %c0_195] : memref<2x1x4xf32, #tpu.memory_space<vmem>>, vector<1x1x4xf32>
    %263 = vector.shape_cast %262 : vector<1x1x4xf32> to vector<1x4xf32>
    %264 = vector.broadcast %263 : vector<1x4xf32> to vector<8x4xf32>
    %265 = arith.addf %261, %264 : vector<8x4xf32>
    %c1_196 = arith.constant 1 : index
    %c0_197 = arith.constant 0 : index
    %c0_198 = arith.constant 0 : index
    %266 = vector.load %arg16[%c1_196, %c0_197, %c0_198] : memref<2x32x4xf32, #tpu.memory_space<vmem>>, vector<1x32x4xf32>
    %267 = vector.shape_cast %266 : vector<1x32x4xf32> to vector<32x4xf32>
    %cst_199 = arith.constant dense<0.000000e+00> : vector<8x4xf32>
    %268 = tpu.matmul %258, %267, %cst_199 {dimension_numbers = #tpu.dot_dimension_numbers<[1], [0], [0], [1], [0, 0, 1, 1], [], []>} : vector<8x32xf32>, vector<32x4xf32>, vector<8x4xf32> -> vector<8x4xf32>
    %c1_200 = arith.constant 1 : index
    %c0_201 = arith.constant 0 : index
    %c0_202 = arith.constant 0 : index
    %269 = vector.load %arg17[%c1_200, %c0_201, %c0_202] : memref<2x1x4xf32, #tpu.memory_space<vmem>>, vector<1x1x4xf32>
    %270 = vector.shape_cast %269 : vector<1x1x4xf32> to vector<1x4xf32>
    %271 = vector.broadcast %270 : vector<1x4xf32> to vector<8x4xf32>
    %272 = arith.addf %268, %271 : vector<8x4xf32>
    %c1_203 = arith.constant 1 : index
    %c0_204 = arith.constant 0 : index
    %c0_205 = arith.constant 0 : index
    %273 = vector.load %arg14[%c1_203, %c0_204, %c0_205] : memref<2x8x8xf32, #tpu.memory_space<vmem>>, vector<1x8x8xf32>
    %274 = vector.shape_cast %273 : vector<1x8x8xf32> to vector<8x8xf32>
    %275 = arith.subf %180, %265 : vector<8x4xf32>
    %cst_206 = arith.constant dense<0.000000e+00> : vector<8x4xf32>
    %276 = tpu.matmul %274, %275, %cst_206 {dimension_numbers = #tpu.dot_dimension_numbers<[1], [0], [0], [1], [0, 0, 1, 1], [], []>} : vector<8x8xf32>, vector<8x4xf32>, vector<8x4xf32> -> vector<8x4xf32>
    %c1_207 = arith.constant 1 : index
    %c0_208 = arith.constant 0 : index
    %c0_209 = arith.constant 0 : index
    %277 = vector.load %arg15[%c1_207, %c0_208, %c0_209] : memref<2x8x8xf32, #tpu.memory_space<vmem>>, vector<1x8x8xf32>
    %278 = vector.shape_cast %277 : vector<1x8x8xf32> to vector<8x8xf32>
    %cst_210 = arith.constant dense<0.000000e+00> : vector<8x4xf32>
    %279 = tpu.matmul %278, %272, %cst_210 {dimension_numbers = #tpu.dot_dimension_numbers<[1], [0], [0], [1], [0, 0, 1, 1], [], []>} : vector<8x8xf32>, vector<8x4xf32>, vector<8x4xf32> -> vector<8x4xf32>
    %280 = arith.addf %276, %279 : vector<8x4xf32>
    %281 = arith.addf %181, %214 : vector<8x32xf32>
    %282 = vector.extract_strided_slice %258 {offsets = [7, 0], sizes = [1, 32], strides = [1, 1]} : vector<8x32xf32> to vector<1x32xf32>
    %283 = arith.addf %183, %282 : vector<1x32xf32>
    %c0_211 = arith.constant 0 : index
    %c0_212 = arith.constant 0 : index
    %284 = vector.load %arg28[%c0_211, %c0_212] : memref<4x8xf32, #tpu.memory_space<vmem>>, vector<4x8xf32>
    %cst_213 = arith.constant dense<0.000000e+00> : vector<4x32xf32>
    %285 = tpu.matmul %284, %281, %cst_213 {dimension_numbers = #tpu.dot_dimension_numbers<[1], [0], [0], [1], [0, 0, 1, 1], [], []>} : vector<4x8xf32>, vector<8x32xf32>, vector<4x32xf32> -> vector<4x32xf32>
    %c0_214 = arith.constant 0 : index
    %c0_215 = arith.constant 0 : index
    %286 = vector.load %arg29[%c0_214, %c0_215] : memref<4x32xf32, #tpu.memory_space<vmem>>, vector<4x32xf32>
    %287 = vector.broadcast %283 : vector<1x32xf32> to vector<4x32xf32>
    %288 = arith.mulf %286, %287 : vector<4x32xf32>
    %289 = arith.addf %285, %288 : vector<4x32xf32>
    %c0_216 = arith.constant 0 : index
    %c0_217 = arith.constant 0 : index
    %290 = vector.load %arg30[%c0_216, %c0_217] : memref<32x4xf32, #tpu.memory_space<vmem>>, vector<32x4xf32>
    %cst_218 = arith.constant dense<0.000000e+00> : vector<4x4xf32>
    %291 = tpu.matmul %289, %290, %cst_218 {dimension_numbers = #tpu.dot_dimension_numbers<[1], [0], [0], [1], [0, 0, 1, 1], [], []>} : vector<4x32xf32>, vector<32x4xf32>, vector<4x4xf32> -> vector<4x4xf32>
    %c0_219 = arith.constant 0 : index
    %c0_220 = arith.constant 0 : index
    %292 = vector.load %arg31[%c0_219, %c0_220] : memref<1x4xf32, #tpu.memory_space<vmem>>, vector<1x4xf32>
    %293 = vector.broadcast %292 : vector<1x4xf32> to vector<4x4xf32>
    %294 = arith.addf %291, %293 : vector<4x4xf32>
    %295 = vector.extract_strided_slice %280 {offsets = [7, 0], sizes = [1, 4], strides = [1, 1]} : vector<8x4xf32> to vector<1x4xf32>
    %296 = vector.broadcast %295 : vector<1x4xf32> to vector<4x4xf32>
    %297 = arith.addf %294, %296 : vector<4x4xf32>
    %c0_221 = arith.constant 0 : index
    %c0_222 = arith.constant 0 : index
    %c0_223 = arith.constant 0 : index
    %298 = vector.load %arg32[%c0_221, %c0_222, %c0_223] : memref<1x4x4xf32, #tpu.memory_space<vmem>>, vector<1x4x4xf32>
    %299 = vector.shape_cast %298 : vector<1x4x4xf32> to vector<4x4xf32>
    %300 = vector.shape_cast %297 : vector<4x4xf32> to vector<1x4x4xf32>
    tpu.vector_store %arg32[%c0_221, %c0_222, %c0_223], %300 {strides = array<i32>} : memref<1x4x4xf32, #tpu.memory_space<vmem>>, vector<1x4x4xf32>,
    return
  }
  func.func @transform_0(%arg0: i32) -> (i32, i32, i32) {
    %c0_i32 = arith.constant 0 : i32
    %c0_i32_0 = arith.constant 0 : i32
    %c0_i32_1 = arith.constant 0 : i32
    return %arg0, %c0_i32, %c0_i32_0 : i32, i32, i32
  }
  func.func @transform_1(%arg0: i32) -> (i32, i32, i32) {
    %c0_i32 = arith.constant 0 : i32
    %c0_i32_0 = arith.constant 0 : i32
    %c0_i32_1 = arith.constant 0 : i32
    return %arg0, %c0_i32, %c0_i32_0 : i32, i32, i32
  }
  func.func @transform_2(%arg0: i32) -> (i32, i32) {
    %c0_i32 = arith.constant 0 : i32
    %c0_i32_0 = arith.constant 0 : i32
    %c0_i32_1 = arith.constant 0 : i32
    return %c0_i32, %c0_i32_0 : i32, i32
  }
  func.func @transform_3(%arg0: i32) -> (i32, i32) {
    %c0_i32 = arith.constant 0 : i32
    %c0_i32_0 = arith.constant 0 : i32
    %c0_i32_1 = arith.constant 0 : i32
    return %c0_i32, %c0_i32_0 : i32, i32
  }
  func.func @transform_4(%arg0: i32) -> (i32, i32) {
    %c0_i32 = arith.constant 0 : i32
    %c0_i32_0 = arith.constant 0 : i32
    %c0_i32_1 = arith.constant 0 : i32
    return %c0_i32, %c0_i32_0 : i32, i32
  }
  func.func @transform_5(%arg0: i32) -> (i32, i32) {
    %c0_i32 = arith.constant 0 : i32
    %c0_i32_0 = arith.constant 0 : i32
    %c0_i32_1 = arith.constant 0 : i32
    return %c0_i32, %c0_i32_0 : i32, i32
  }
  func.func @transform_6(%arg0: i32) -> (i32, i32, i32) {
    %c0_i32 = arith.constant 0 : i32
    %c0_i32_0 = arith.constant 0 : i32
    %c0_i32_1 = arith.constant 0 : i32
    %c0_i32_2 = arith.constant 0 : i32
    return %c0_i32, %c0_i32_0, %c0_i32_1 : i32, i32, i32
  }
  func.func @transform_7(%arg0: i32) -> (i32, i32, i32) {
    %c0_i32 = arith.constant 0 : i32
    %c0_i32_0 = arith.constant 0 : i32
    %c0_i32_1 = arith.constant 0 : i32
    %c0_i32_2 = arith.constant 0 : i32
    return %c0_i32, %c0_i32_0, %c0_i32_1 : i32, i32, i32
  }
  func.func @transform_8(%arg0: i32) -> (i32, i32, i32) {
    %c0_i32 = arith.constant 0 : i32
    %c0_i32_0 = arith.constant 0 : i32
    %c0_i32_1 = arith.constant 0 : i32
    %c0_i32_2 = arith.constant 0 : i32
    return %c0_i32, %c0_i32_0, %c0_i32_1 : i32, i32, i32
  }
  func.func @transform_9(%arg0: i32) -> (i32, i32, i32) {
    %c0_i32 = arith.constant 0 : i32
    %c0_i32_0 = arith.constant 0 : i32
    %c0_i32_1 = arith.constant 0 : i32
    %c0_i32_2 = arith.constant 0 : i32
    return %c0_i32, %c0_i32_0, %c0_i32_1 : i32, i32, i32
  }
  func.func @transform_10(%arg0: i32) -> (i32, i32, i32) {
    %c0_i32 = arith.constant 0 : i32
    %c0_i32_0 = arith.constant 0 : i32
    %c0_i32_1 = arith.constant 0 : i32
    %c0_i32_2 = arith.constant 0 : i32
    return %c0_i32, %c0_i32_0, %c0_i32_1 : i32, i32, i32
  }
  func.func @transform_11(%arg0: i32) -> (i32, i32, i32, i32) {
    %c0_i32 = arith.constant 0 : i32
    %c0_i32_0 = arith.constant 0 : i32
    %c0_i32_1 = arith.constant 0 : i32
    %c0_i32_2 = arith.constant 0 : i32
    %c0_i32_3 = arith.constant 0 : i32
    return %c0_i32, %c0_i32_0, %c0_i32_1, %c0_i32_2 : i32, i32, i32, i32
  }
  func.func @transform_12(%arg0: i32) -> (i32, i32, i32) {
    %c0_i32 = arith.constant 0 : i32
    %c0_i32_0 = arith.constant 0 : i32
    %c0_i32_1 = arith.constant 0 : i32
    %c0_i32_2 = arith.constant 0 : i32
    return %c0_i32, %c0_i32_0, %c0_i32_1 : i32, i32, i32
  }
  func.func @transform_13(%arg0: i32) -> (i32, i32, i32) {
    %c0_i32 = arith.constant 0 : i32
    %c0_i32_0 = arith.constant 0 : i32
    %c0_i32_1 = arith.constant 0 : i32
    %c0_i32_2 = arith.constant 0 : i32
    return %c0_i32, %c0_i32_0, %c0_i32_1 : i32, i32, i32
  }
  func.func @transform_14(%arg0: i32) -> (i32, i32, i32) {
    %c0_i32 = arith.constant 0 : i32
    %c0_i32_0 = arith.constant 0 : i32
    %c0_i32_1 = arith.constant 0 : i32
    %c0_i32_2 = arith.constant 0 : i32
    return %c0_i32, %c0_i32_0, %c0_i32_1 : i32, i32, i32
  }
  func.func @transform_15(%arg0: i32) -> (i32, i32, i32) {
    %c0_i32 = arith.constant 0 : i32
    %c0_i32_0 = arith.constant 0 : i32
    %c0_i32_1 = arith.constant 0 : i32
    %c0_i32_2 = arith.constant 0 : i32
    return %c0_i32, %c0_i32_0, %c0_i32_1 : i32, i32, i32
  }
  func.func @transform_16(%arg0: i32) -> (i32, i32, i32) {
    %c0_i32 = arith.constant 0 : i32
    %c0_i32_0 = arith.constant 0 : i32
    %c0_i32_1 = arith.constant 0 : i32
    %c0_i32_2 = arith.constant 0 : i32
    return %c0_i32, %c0_i32_0, %c0_i32_1 : i32, i32, i32
  }
  func.func @transform_17(%arg0: i32) -> (i32, i32, i32) {
    %c0_i32 = arith.constant 0 : i32
    %c0_i32_0 = arith.constant 0 : i32
    %c0_i32_1 = arith.constant 0 : i32
    %c0_i32_2 = arith.constant 0 : i32
    return %c0_i32, %c0_i32_0, %c0_i32_1 : i32, i32, i32
  }
  func.func @transform_18(%arg0: i32) -> (i32, i32, i32) {
    %c0_i32 = arith.constant 0 : i32
    %c0_i32_0 = arith.constant 0 : i32
    %c0_i32_1 = arith.constant 0 : i32
    %c0_i32_2 = arith.constant 0 : i32
    return %c0_i32, %c0_i32_0, %c0_i32_1 : i32, i32, i32
  }
  func.func @transform_19(%arg0: i32) -> (i32, i32, i32) {
    %c0_i32 = arith.constant 0 : i32
    %c0_i32_0 = arith.constant 0 : i32
    %c0_i32_1 = arith.constant 0 : i32
    %c0_i32_2 = arith.constant 0 : i32
    return %c0_i32, %c0_i32_0, %c0_i32_1 : i32, i32, i32
  }
  func.func @transform_20(%arg0: i32) -> (i32, i32, i32) {
    %c0_i32 = arith.constant 0 : i32
    %c0_i32_0 = arith.constant 0 : i32
    %c0_i32_1 = arith.constant 0 : i32
    %c0_i32_2 = arith.constant 0 : i32
    return %c0_i32, %c0_i32_0, %c0_i32_1 : i32, i32, i32
  }
  func.func @transform_21(%arg0: i32) -> (i32, i32, i32) {
    %c0_i32 = arith.constant 0 : i32
    %c0_i32_0 = arith.constant 0 : i32
    %c0_i32_1 = arith.constant 0 : i32
    %c0_i32_2 = arith.constant 0 : i32
    return %c0_i32, %c0_i32_0, %c0_i32_1 : i32, i32, i32
  }
  func.func @transform_22(%arg0: i32) -> (i32, i32, i32) {
    %c0_i32 = arith.constant 0 : i32
    %c0_i32_0 = arith.constant 0 : i32
    %c0_i32_1 = arith.constant 0 : i32
    %c0_i32_2 = arith.constant 0 : i32
    return %c0_i32, %c0_i32_0, %c0_i32_1 : i32, i32, i32
  }
  func.func @transform_23(%arg0: i32) -> (i32, i32, i32) {
    %c0_i32 = arith.constant 0 : i32
    %c0_i32_0 = arith.constant 0 : i32
    %c0_i32_1 = arith.constant 0 : i32
    %c0_i32_2 = arith.constant 0 : i32
    return %c0_i32, %c0_i32_0, %c0_i32_1 : i32, i32, i32
  }
  func.func @transform_24(%arg0: i32) -> (i32, i32, i32) {
    %c0_i32 = arith.constant 0 : i32
    %c0_i32_0 = arith.constant 0 : i32
    %c0_i32_1 = arith.constant 0 : i32
    %c0_i32_2 = arith.constant 0 : i32
    return %c0_i32, %c0_i32_0, %c0_i32_1 : i32, i32, i32
  }
  func.func @transform_25(%arg0: i32) -> (i32, i32, i32) {
    %c0_i32 = arith.constant 0 : i32
    %c0_i32_0 = arith.constant 0 : i32
    %c0_i32_1 = arith.constant 0 : i32
    %c0_i32_2 = arith.constant 0 : i32
    return %c0_i32, %c0_i32_0, %c0_i32_1 : i32, i32, i32
  }
  func.func @transform_26(%arg0: i32) -> (i32, i32, i32) {
    %c0_i32 = arith.constant 0 : i32
    %c0_i32_0 = arith.constant 0 : i32
    %c0_i32_1 = arith.constant 0 : i32
    %c0_i32_2 = arith.constant 0 : i32
    return %c0_i32, %c0_i32_0, %c0_i32_1 : i32, i32, i32
  }
  func.func @transform_27(%arg0: i32) -> (i32, i32) {
    %c0_i32 = arith.constant 0 : i32
    %c0_i32_0 = arith.constant 0 : i32
    %c0_i32_1 = arith.constant 0 : i32
    return %c0_i32, %c0_i32_0 : i32, i32
  }
  func.func @transform_28(%arg0: i32) -> (i32, i32) {
    %c0_i32 = arith.constant 0 : i32
    %c0_i32_0 = arith.constant 0 : i32
    %c0_i32_1 = arith.constant 0 : i32
    return %c0_i32, %c0_i32_0 : i32, i32
  }
  func.func @transform_29(%arg0: i32) -> (i32, i32) {
    %c0_i32 = arith.constant 0 : i32
    %c0_i32_0 = arith.constant 0 : i32
    %c0_i32_1 = arith.constant 0 : i32
    return %c0_i32, %c0_i32_0 : i32, i32
  }
  func.func @transform_30(%arg0: i32) -> (i32, i32) {
    %c0_i32 = arith.constant 0 : i32
    %c0_i32_0 = arith.constant 0 : i32
    %c0_i32_1 = arith.constant 0 : i32
    return %c0_i32, %c0_i32_0 : i32, i32
  }
  func.func @transform_31(%arg0: i32) -> (i32, i32, i32) {
    %c0_i32 = arith.constant 0 : i32
    %c0_i32_0 = arith.constant 0 : i32
    %c0_i32_1 = arith.constant 0 : i32
    return %arg0, %c0_i32, %c0_i32_0 : i32, i32, i32
  }
}

</mosaic_0001>

<bundles_post_ra>
// kernel: _model_forward.1
= control target key start
LH: loop header
LB: loop body
LE: loop exit
PB: predicated region body
PF: predicated region fallthrough
CT: control target
= control target key end

     0   :  { %s2453_s6 = smov 1   ;;  %s2454_s10 = smov 2   ;;  %s2948_s0 = inlined_call_operand.smem [shape: u32[32], index: -1, kind: input, shape index: {}] }
   0x1   :  { %s2499_s5 = sld [smem:[%s2948_s0]]   ;;  %s2455_s14 = smov 3  }
   0x2   :  { %s2504_s9 = sld [smem:[%s2948_s0 + %s2453_s6]]   ;;  %s2456_s18 = smov 4  }
   0x3   :  { %s2509_s13 = sld [smem:[%s2948_s0 + %s2454_s10]]   ;;  %s2457_s22 = smov 5  }
   0x4   :  { %s2514_s17 = sld [smem:[%s2948_s0 + %s2455_s14]]   ;;  %s2458_s26 = smov 6  }
   0x5   :  { %s2519_s21 = sld [smem:[%s2948_s0 + %s2456_s18]]   ;;  %s2459_s30 = smov 7  }
   0x6   :  { %s2524_s25 = sld [smem:[%s2948_s0 + %s2457_s22]]   ;;  %s2460_s4 = smov 8  }
   0x7   :  { %2971 = sst [smem:[#allocation6_spill]] %s2499_s5  ;;  %s2461_s10 = smov 9  }
   0x8   :  { %2972 = sst [smem:[#allocation7_spill]] %s2504_s9  ;;  %s2462_s15 = smov 10  }
   0x9   :  { %2973 = sst [smem:[#allocation8_spill]] %s2509_s13  ;;  %s2463_s20 = smov 11  }
   0xa   :  { %2974 = sst [smem:[#allocation9_spill]] %s2514_s17  ;;  %s2465_s1 = smov 13  }
   0xb   :  { %s2529_s29 = sld [smem:[%s2948_s0 + %s2458_s26]]   ;;  %s2464_s26 = smov 12  }
   0xc   :  { %s2534_s3 = sld [smem:[%s2948_s0 + %s2459_s30]]   ;;  %s2466_s7 = smov 14  }
   0xd   :  { %s2539_s8 = sld [smem:[%s2948_s0 + %s2460_s4]]   ;;  %s2468_s22 = smov 16  }
   0xe   :  { %s2544_s14 = sld [smem:[%s2948_s0 + %s2461_s10]]   ;;  %s2469_s28 = smov 17  }
   0xf   :  { %s2549_s19 = sld [smem:[%s2948_s0 + %s2462_s15]]   ;;  %s2467_s15 = smov 15  }
  0x10   :  { %s2554_s24 = sld [smem:[%s2948_s0 + %s2463_s20]]  }
  0x11   :  { %s2559_s30 = sld [smem:[%s2948_s0 + %s2464_s26]]  }
  0x12   :  { %2975 = sst [smem:[#allocation10_spill]] %s2534_s3 }
  0x13   :  { %s2564_s6 = sld [smem:[%s2948_s0 + %s2465_s1]]  }
  0x14   :  { %2976 = sst [smem:[#allocation11_spill]] %s2544_s14 }
  0x15   :  { %s2569_s12 = sld [smem:[%s2948_s0 + %s2466_s7]]   ;;  %s2470_s7 = smov 18  }
  0x16   :  { %s2574_s20 = sld [smem:[%s2948_s0 + %s2467_s15]]   ;;  %s2471_s15 = smov 19  }
  0x17   :  { %2977 = sst [smem:[#allocation12_spill]] %s2559_s30 }
  0x18   :  { %s2579_s27 = sld [smem:[%s2948_s0 + %s2468_s22]]   ;;  %s2472_s22 = smov 20  }
  0x19   :  { %2978 = sst [smem:[#allocation13_spill]] %s2564_s6 }
  0x1a   :  { %s2584_s4 = sld [smem:[%s2948_s0 + %s2469_s28]]   ;;  %s2473_s28 = smov 21  }
  0x1b   :  { %2979 = sst [smem:[#allocation14_spill]] %s2569_s12 }
  0x1c   :  { %s2589_s6 = sld [smem:[%s2948_s0 + %s2470_s7]]   ;;  %s2474_s7 = smov 22  }
  0x1d   :  { %s2594_s12 = sld [smem:[%s2948_s0 + %s2471_s15]]   ;;  %s2475_s15 = smov 23  }
  0x1e   :  { %2980 = sst [smem:[#allocation15_spill]] %s2579_s27 }
  0x1f   :  { %s2599_s27 = sld [smem:[%s2948_s0 + %s2472_s22]]   ;;  %s2476_s22 = smov 24  }
  0x20   :  { %2981 = sst [smem:[#allocation16_spill]] %s2584_s4 }
  0x21   :  { %s2604_s14 = sld [smem:[%s2948_s0 + %s2473_s28]]   ;;  %s2477_s28 = smov 25  }
  0x22   :  { %2982 = sst [smem:[#allocation17_spill]] %s2589_s6 }
  0x23   :  { %2983 = sst [smem:[#allocation18_spill]] %s2594_s12 }
  0x24   :  { %s2609_s30 = sld [smem:[%s2948_s0 + %s2474_s7]]   ;;  %s2478_s7 = smov 26  }
  0x25   :  { %2984 = sst [smem:[#allocation19_spill]] %s2599_s27 }
  0x26   :  { %s2614_s12 = sld [smem:[%s2948_s0 + %s2475_s15]]   ;;  %s2479_s15 = smov 27  }
  0x27   :  { %2985 = sst [smem:[#allocation20_spill]] %s2604_s14 }
  0x28   :  { %s2619_s27 = sld [smem:[%s2948_s0 + %s2476_s22]]   ;;  %s2480_s22 = smov 28  }
  0x29   :  { %s2624_s14 = sld [smem:[%s2948_s0 + %s2477_s28]]   ;;  %s2481_s28 = smov 29  }
  0x2a   :  { %2986 = sst [smem:[#allocation21_spill]] %s2609_s30 }
  0x2b   :  { %s2629_s30 = sld [smem:[%s2948_s0 + %s2478_s7]]   ;;  %s2482_s7 = smov 30  }
  0x2c   :  { %2987 = sst [smem:[#allocation22_spill]] %s2614_s12 }
  0x2d   :  { %s2634_s12 = sld [smem:[%s2948_s0 + %s2479_s15]]   ;;  %s2483_s15 = smov 31  }
  0x2e   :  { %2988 = sst [smem:[#allocation23_spill]] %s2619_s27 }
  0x2f   :  { %2989 = sst [smem:[#allocation24_spill]] %s2624_s14 }
  0x30   :  { %s2639_s27 = sld [smem:[%s2948_s0 + %s2480_s22]]  }
  0x31   :  { %2990 = sst [smem:[#allocation25_spill]] %s2629_s30 }
  0x32   :  { %s2644_s14 = sld [smem:[%s2948_s0 + %s2481_s28]]  }
  0x33   :  { %2991 = sst [smem:[#allocation26_spill]] %s2634_s12 }
  0x34   :  { %s2649_s30 = sld [smem:[%s2948_s0 + %s2482_s7]]  }
  0x35   :  { %s2654_s12 = sld [smem:[%s2948_s0 + %s2483_s15]]  }
  0x36   :  { %68 = vsyncpa [#allocation4], 0 }
  0x37   :  { %70 = vsyncpa [#allocation4 + $0x1], 0  ;;  %s2656_s22 = smov 0   ;;  %s2658_s23 = smov 0  }
  0x38   :  { %s2660_s26 = smov 0   ;;  %s2662_s28 = smov 0  }
  0x39 LB: > { %s2992_s6 = sld [smem:[#allocation17_spill]]  ;;  %s2677_s0 = sadd.s32 4294967295, %s2451_s28   ;;  %s2451_s28 = sphi %s2662_s28, %s3025_s28   ;;  %s2447_s26 = sphi %s2660_s26, %s3024_s26   ;;  %s2443_s23 = sphi %s2658_s23, %s3023_s23   ;;  %s2439_s22 = sphi %s2656_s22, %s3022_s22  }
  0x3a   : > { %s2993_s4 = sld [smem:[#allocation16_spill]]  ;;  %s2210_s1 = sadd.s32 4294967294, %s2451_s28  }
  0x3b   : > { %s2994_s3 = sld [smem:[#allocation10_spill]]  ;;  %s2681_s2 = sadd.s32 1, %s2451_s28  }
  0x3c   : > { %s2995_s13 = sld [smem:[#allocation8_spill]]  ;;  %s744_s7 = sadd.s32 1, %s2447_s26 }
  0x3d   : > { %s741_s10 = ssub.s32 %s2451_s28, %s2681_s2  ;;  %p754_p0 = scmp.ne.s32.totalorder %s2447_s26, %s2443_s23 }
  0x3e   : > { %p742_p1 = scmp.eq.s32.totalorder %s741_s10, 0  ;;  %p755_p2 = scmp.eq.s32.totalorder %s2677_s0, 1 }
  0x3f   : > { %p760_p3 = scmp.ne.s32.totalorder %s2443_s23, %s2439_s22  ;;  %p761_p4 = scmp.eq.s32.totalorder %s2210_s1, 1 }
  0x40   : > { %s2692_s11 = scalar_select %p742_p1, %s2447_s26, %s744_s7  }
  0x41   : > { %p2694_p5 = por %p755_p2, %p754_p0  ;;  %p2698_p6 = por %p761_p4, %p760_p3 }
  0x42   : > { %p2213_p7 = scmp.ge.s32.totalorder %s2451_s28, 1  ;;  %p880_p8 = scmp.lt.s32.totalorder %s2451_s28, 3 }
  0x44   : > { %p881_p9 = pnand %p2213_p7, %p880_p8 }
  0x45   : > { %s2998_s5 = sld [smem:[#allocation6_spill]] (!%p881_p9)  ;;  %p963_p10 = scmp.lt.s32.totalorder (!%p881_p9), %s2677_s0, 1 }
  0x46   : > { %884 = sbr.rel (%p881_p9) target bundleno = 3250 (0xcb2), region = 144  ;;  %s2999_s17 = sld [smem:[#allocation9_spill]] (!%p881_p9) }
  0x47   : > { %s2957_s10 = smov (!%p881_p9), 104   ;;  %s3000_s9 = sld [smem:[#allocation7_spill]] (!%p881_p9) }
  0x4b   : > { %v973_v0 = vld [vmem:[%s2995_s13 + $0x8] sm:$0xf]  ;;  %vm982_vm0 = vcmask 1043456   ;;  %v972_v1 = vld [vmem:[%s2995_s13] sm:$0xff]  ;;  %s2708_s18 = scalar_select %p963_p10, %s2677_s0, 1  ;;  %vm978_vm1 = vcmask 97280   ;;  %v1049_v20 = vlaneseq }
  0x4c   : > { %2217 = vmatpush.msk.msra.mxu0 %vm982_vm0, %v973_v0  ;;  %v2363_v3 = vld [vmem:[%s2999_s17] ss:$0 sm:$0xff]  ;;  %vm1009_vm2 = vcmask 64512   ;;  %v1008_v7 = vld [vmem:[%s2519_s21 + $0x8] sm:$0x3]  ;;  %vm1043_vm3 = vcmask 1042432  }
  0x4d   : > { %s2956_s1 = sshll.u32 %s2708_s18, 3  ;;  %v2718_v6 = vld [vmem:[%s2519_s21] sm:$0xff]  ;;  %vm1051_vm4 = vcmask 258048   ;;  %v2727_v23 = vshrl.u32 %v1049_v20, 7  ;;  %v1126_v28 = vld [vmem:[%s2529_s29 + $0x18] sm:$0xff]  ;;  %v1125_v29 = vld [vmem:[%s2529_s29 + $0x10] sm:$0xff] }
  0x4e   : > { %1001 = vmatpush.msra.mxu0 %v972_v1  ;;  %s966_s7 = scalar_lea.vmem %s2998_s5, %s2956_s1  ;;  %1147 = vmatpush.msra.mxu3 %v1126_v28  ;;  %vm1099_vm11 = vcmask 1041408   ;;  %vm1092_vm12 = vcmask 1044480   ;;  %v2739_v50 = vld [vmem:[%s2524_s25] sm:$0xff]  ;;  %vm1095_vm13 = vcmask 80896   ;;  %v1124_v51 = vld [vmem:[%s2529_s29 + $0x8] sm:$0xff]  ;;  %vm1131_vm14 = vcmask 261120  }
  0x4f   : > { %v971_v2 = vld [vmem:[%s966_s7] sm:$0xff]  ;;  %vm1159_vm15 = vcmask 1040384   ;;  %s2958_s7 = smov 120   ;;  %s2959_s1 = smov 112   ;;  %v2225_v63 = vld [vmem:[%s2554_s24 + $0x8] sm:$0xff]  ;;  %v2229_v0 = vld [vmem:[%s2554_s24 + $0x18] sm:$0xff] }
  0x50   : > { %2218 = vmatmul.msk.f32.vlgmr.msra.gmra.mxu0 %vm978_vm1, %v971_v2  ;;  %1148 = vmatpush.msra.mxu3 %v1125_v29  ;;  %v1123_v52 = vld [vmem:[%s2529_s29] sm:$0xff]  ;;  %s2962_s5 = smov 16   ;;  %v1295_v20 = vld [vmem:[%s2539_s8 + $0x10] sm:$0xff]  ;;  %vm1220_vm0 = vcmask 130112   ;;  %vm1254_vm1 = vcmask 195712   ;;  %s3008_s13 = sld [smem:[#allocation22_spill]] }
  0x51   : > { %v2364_v55 = vld [vmem:[%s2994_s3] ss:$0 sm:$0xff]  ;;  %s3016_s17 = smov 120  }
  0x52   : > { %1149 = vmatpush.msra.mxu3 %v1124_v51  ;;  %v1155_v58 = vld [vmem:[%s2549_s19] sm:$0x1] }
  0x53   : > { %v1162_v62 = vld [vmem:[%s2554_s24] sm:$0xff] }
  0x54   : > { %1150 = vmatpush.msra.mxu3 %v1123_v52 }
  0xcd   : > { %v1003_v4 = vpop.f32.mrf.mxu0 }
  0xce   : > { %v2715_v5 = vadd.f32 %v2363_v3, %v1003_v4  ;;  %v1490_v3 = vld [vmem:[%s2993_s4 + $0x18] sm:$0xff]  ;;  %v1489_v4 = vld [vmem:[%s2993_s4 + $0x10] sm:$0xff] }
  0xd0   : > { %1031 = vmatpush.msra.mxu1 %v2715_v5 }
  0xd1   : > { %2219 = vmatmul.msk.f32.vlgmr.msra.gmra.mxu1 %vm1009_vm2, %v2718_v6 }
  0xd9   : > { %2220 = vmatmul.msk.f32.gmra.mxu1 %vm1009_vm2, %v1008_v7  ;;  %v1487_v7 = vld [vmem:[%s2993_s4] sm:$0xff] }
 0x14e   : > { %v1033_v8 = vpop.f32.mrf.mxu1 }
 0x14f   : > { %v1039_v9 = vmul.f32 %v1033_v8, %v1033_v8  ;;  %v1084_v43 = vrot.slane %v1033_v8, 5 }
 0x151   : > { %v1044_v12 = vrot.slane %v1039_v9, 5 }
 0x156   : > { %v1036_v10 = vpop.f32.mrf.mxu1 }
 0x157   : > { %v1040_v11 = vmul.f32 %v1036_v10, %v1036_v10  ;;  %v1085_v41 = vrot.slane %v1036_v10, 5 }
 0x159   : > { %v1045_v13 = vrot.slane %v1040_v11, 5  ;;  %v1086_v45 = vsel %vm1043_vm3, %v1084_v43, %v1085_v41  ;;  %v2365_v11 = vld [vmem:[%s2992_s6] ss:$0 sm:$0xff]  ;;  %v2490_v41 = vmov 32.0  }
 0x15a   : > { %2379 = vrcp.f32 %v2490_v41 }
 0x15b   : > { %v1046_v14 = vsel %vm1043_vm3, %v1044_v12, %v1045_v13 }
 0x15c   : > { %v1048_v15 = vadd.f32 %v1046_v14, %v1039_v9 }
 0x15e   : > { %v1052_v16 = vsel %vm1051_vm4, %v1048_v15, -inf }
 0x15f   : > { %v1053_v17 = vrot.slane %v1052_v16, 4 }
 0x161   : > { %v1054_v18 = vmax.f32 %v1052_v16, %v1053_v17 }
 0x163   : > { %v1055_v19 = vrot.slane %v1054_v18, 2 }
 0x165   : > { %v1056_v21 = vmax.f32 %v1054_v18, %v1055_v19  ;;  %v1296_v19 = vld [vmem:[%s2539_s8 + $0x18] sm:$0xff] }
 0x167   : > { %v1057_v22 = vrot.slane %v1056_v21, 1 }
 0x169   : > { %v1058_v24 = vmax.f32 %v1056_v21, %v1057_v22  ;;  %v1294_v21 = vld [vmem:[%s2539_s8 + $0x8] sm:$0xff]  ;;  %v1293_v22 = vld [vmem:[%s2539_s8] sm:$0xff] }
 0x16b   : > { %vm1059_vm5 = vcmp.ge.f32.partialorder %v1048_v15, %v1058_v24  ;;  %v1521_v24 = vld [vmem:[%s2574_s20 + $0x18] sm:$0xff] }
 0x16c   : > { %v1060_v25 = vsel %vm1059_vm5, %v2727_v23, 5  ;;  %vm1288_vm5 = vcmask 261312  }
 0x16d   : > { %v1061_v26 = vsel %vm1051_vm4, %v1060_v25, 2147483647  ;;  %v1520_v25 = vld [vmem:[%s2574_s20 + $0x10] sm:$0xff] }
 0x16e   : > { %v1062_v27 = vrot.slane %v1061_v26, 4 }
 0x170   : > { %vm1063_vm6 = vcmp.lt.s32.totalorder %v1061_v26, %v1062_v27 }
 0x171   : > { %v1064_v30 = vsel %vm1063_vm6, %v1061_v26, %v1062_v27 }
 0x172   : > { %v1065_v31 = vrot.slane %v1064_v30, 2 }
 0x174   : > { %vm1066_vm7 = vcmp.lt.s32.totalorder %v1064_v30, %v1065_v31 }
 0x175   : > { %v1067_v32 = vsel %vm1066_vm7, %v1064_v30, %v1065_v31 }
 0x176   : > { %v1068_v33 = vrot.slane %v1067_v32, 1 }
 0x178   : > { %vm1069_vm8 = vcmp.lt.s32.totalorder %v1067_v32, %v1068_v33 }
 0x179   : > { %v1070_v34 = vsel %vm1069_vm8, %v1067_v32, %v1068_v33  ;;  %v1519_v32 = vld [vmem:[%s2574_s20 + $0x8] sm:$0xff]  ;;  %v1518_v33 = vld [vmem:[%s2574_s20] sm:$0xff] }
 0x17a   : > { %vm1071_vm9 = vcmp.eq.s32.totalorder %v2727_v23, %v1070_v34 }
 0x17b   : > { %v1072_v35 = vsel %vm1071_vm9, -inf, %v1048_v15 }
 0x17c   : > { %v1073_v36 = vsel %vm1051_vm4, %v1072_v35, -inf }
 0x17d   : > { %v1074_v37 = vrot.slane %v1073_v36, 4 }
 0x17f   : > { %v1075_v38 = vmax.f32 %v1073_v36, %v1074_v37 }
 0x181   : > { %v1076_v39 = vrot.slane %v1075_v38, 2 }
 0x183   : > { %v1077_v40 = vmax.f32 %v1075_v38, %v1076_v39 }
 0x185   : > { %v1078_v42 = vrot.slane %v1077_v40, 1 }
 0x187   : > { %v1079_v44 = vmax.f32 %v1077_v40, %v1078_v42 }
 0x189   : > { %vm1080_vm10 = vcmp.ge.f32.partialorder %v1048_v15, %v1079_v44  ;;  %v2380_v44 = vpop.eup %2379 }
 0x18a   : > { %v1088_v46 = vsel %vm1080_vm10, %v1086_v45, 0.0  ;;  %v1081_v48 = vsel %vm1080_vm10, %v1033_v8, 0.0  ;;  %v2227_v8 = vld [vmem:[%s2554_s24 + $0x10] sm:$0xff]  ;;  %v1331_v45 = vmul.f32 32.0, %v2380_v44  ;;  %vm1335_vm6 = vweird.f32 %v2380_v44 }
 0x18b   : > { %v1090_v47 = vrot.slane %v1088_v46, 3 }
 0x18c   : > { %v1332_v46 = vsub.f32 1.0, %v1331_v45 }
 0x18d   : > { %2221 = vmatpush.msk.msra.mxu2 %vm1099_vm11, %v1090_v47  ;;  %v1093_v49 = vsel %vm1092_vm12, %v1081_v48, %v1090_v47 }
 0x18e   : > { %v1333_v47 = vmul.f32 %v2380_v44, %v1332_v46 }
 0x18f   : > { %1117 = vmatpush.msra.mxu2 %v1093_v49 }
 0x190   : > { %2222 = vmatmul.msk.f32.vlgmr.msra.gmra.mxu2 %vm1095_vm13, %v2739_v50  ;;  %v1334_v48 = vadd.f32 %v2380_v44, %v1333_v47 }
 0x192   : > { %v2806_v49 = vsel %vm1335_vm6, %v2380_v44, %v1334_v48 }
 0x213   : > { %v2745_v53 = vpop.f32.mrf.mxu2 }
 0x214   : > { %v2749_v54 = vsub.f32 %v2715_v5, %v2745_v53  ;;  %v1488_v5 = vld [vmem:[%s2993_s4 + $0x8] sm:$0xff] }
 0x216   : > { %2223 = vmatmul.msk.f32.vlgmr.msra.gmra.mxu3 %vm1131_vm14, %v2749_v54 }
 0x299   : > { %v1152_v56 = vpop.f32.mrf.mxu3 }
 0x29a   : > { %v1153_v57 = vadd.f32 %v2364_v55, %v1152_v56 }
 0x29c   : > { %v1157_v59 = vrot.slane %v1153_v57, 7 }
 0x29e   : > { %v1160_v60 = vsel %vm1159_vm15, %v1155_v58, %v1157_v59 }
 0x29f   : > { %v1161_v61 = vsub.f32 %v1153_v57, %v1160_v60 }
 0x2a1   : > { %1258 = vrot.lane.b32.xlu1 %v1161_v61, %s2957_s10  ;;  %1190 = vrot.lane.b32.xlu0 %v1161_v61, %s2958_s7  ;;  %s3001_s10 = sshll.u32 %s2708_s18, 3  ;;  %s2960_s18 = smov 24  }
 0x2a2   : > { %1181 = vmatpush.msrb.mxu0 %v1161_v61  ;;  %s970_s7 = scalar_lea.vmem %s3000_s9, %s3001_s10  ;;  %s3002_s10 = sld [smem:[#allocation12_spill]] }
 0x2a3   : > { %2224 = vmatmul.msk.f32.vlgmr.msrb.gmra.mxu0 %vm1009_vm2, %v1162_v62  ;;  %v1006_v13 = vld [vmem:[%s970_s7] sm:$0xff]  ;;  %s3003_s7 = sld [smem:[#allocation11_spill]] }
 0x2a4   : > { %1316 = vmatpush.msra.mxu0 %v1296_v19  ;;  %s3007_s9 = sld [smem:[#allocation19_spill]]  ;;  %v1422_v19 = vld [vmem:[%s3008_s13 + $0x40] sm:$0xff] }
 0x2a6   : > { %1317 = vmatpush.msra.mxu0 %v1295_v20  ;;  %v1421_v20 = vld [vmem:[%s3008_s13 + $0x38] sm:$0xff] }
 0x2a8   : > { %1318 = vmatpush.msra.mxu0 %v1294_v21  ;;  %v1291_v29 = vld [vmem:[%s3002_s10] sm:$0xff]  ;;  %v1420_v21 = vld [vmem:[%s3008_s13 + $0x30] sm:$0xff] }
 0x2a9   : > { %1224 = vrot.lane.b32.xlu0 %v1161_v61, %s2959_s1  ;;  %s2961_s1 = smov 8   ;;  %v2366_v34 = vld [vmem:[%s3003_s7] ss:$0 sm:$0xff] }
 0x2aa   : > { %1319 = vmatpush.msra.mxu0 %v1293_v22  ;;  %v1419_v22 = vld [vmem:[%s3008_s13 + $0x28] sm:$0xff] }
 0x2ac   : > { %1541 = vmatpush.msrb.mxu0 %v1521_v24  ;;  %v1418_v24 = vld [vmem:[%s3008_s13 + $0x20] sm:$0xff] }
 0x2ae   : > { %1542 = vmatpush.msrb.mxu0 %v1520_v25  ;;  %v1417_v25 = vld [vmem:[%s3008_s13 + $0x18] sm:$0xff] }
 0x2b0   : > { %1543 = vmatpush.msrb.mxu0 %v1519_v32 }
 0x2b2   : > { %1544 = vmatpush.msrb.mxu0 %v1518_v33 }
 0x313   : > { %v1259_v1 = vpop.permute.xlu1 %1258  ;;  %v1191_v2 = vpop.permute.xlu0 %1190 }
 0x314   : > { %1211 = vmatpush.msrb.mxu2 %v1191_v2  ;;  %1279 = vmatpush.msrb.mxu1 %v1259_v1 }
 0x315   : > { %2226 = vmatmul.msk.f32.vlgmr.msrb.gmra.mxu2 %vm1009_vm2, %v2225_v63  ;;  %2230 = vmatmul.msk.f32.vlgmr.msrb.gmra.mxu1 %vm1009_vm2, %v2229_v0 }
 0x316   : > { %1510 = vmatpush.msra.mxu1 %v1490_v3 }
 0x318   : > { %1511 = vmatpush.msra.mxu1 %v1489_v4 }
 0x31a   : > { %1512 = vmatpush.msra.mxu1 %v1488_v5 }
 0x31b   : > { %v1225_v9 = vpop.permute.xlu0 %1224 }
 0x31c   : > { %1245 = vmatpush.msrb.mxu3 %v1225_v9  ;;  %1513 = vmatpush.msra.mxu1 %v1487_v7  ;;  %v2369_v9 = vld [vmem:[%s3007_s9] ss:$0 sm:$0xff]  ;;  %s3010_s9 = sld [smem:[#allocation23_spill]] }
 0x31d   : > { %2234 = vmatmul.msk.f32.vlgmr.msra.gmra.mxu1 %vm1131_vm14, %v2745_v53  ;;  %2228 = vmatmul.msk.f32.vlgmr.msrb.gmra.mxu3 %vm1009_vm2, %v2227_v8 }
 0x320   : > { %v1183_v18 = vpop.f32.mrf.mxu0 }
 0x321   : > { %1186 = vst.msk [vmem:[#allocation2] sm:$0xff] %vm1009_vm2, %v1183_v18  ;;  %v1423_v18 = vld [vmem:[%s3008_s13 + $0x48] sm:$0xff] }
 0x322   : > { %v2371_v46 = vld [vmem:[%s3010_s9] ss:$0 sm:$0xff]  ;;  %s3013_s9 = sld [smem:[#allocation14_spill]] }
 0x392   : > { %v1281_v10 = vpop.f32.mrf.mxu1 }
 0x398   : > { %v1213_v12 = vpop.f32.mrf.mxu2 }
 0x399   : > { %1217 = vrot.lane.b32.xlu1 %v1213_v12, %s2961_s1  ;;  %s3005_s1 = sld [smem:[#allocation15_spill]]  ;;  %v1429_v12 = vld [vmem:[%s3008_s13 + $0x78] sm:$0xff] }
 0x39a   : > { %v1515_v14 = vpop.f32.mrf.mxu1  ;;  %1434 = vmatpush.msra.mxu3 %v1429_v12 }
 0x39b   : > { %v1516_v15 = vadd.f32 %v2365_v11, %v1515_v14  ;;  %v1427_v14 = vld [vmem:[%s3008_s13 + $0x68] sm:$0xff] }
 0x39d   : > { %v1550_v16 = vsub.f32 %v1006_v13, %v1516_v15  ;;  %v1428_v13 = vld [vmem:[%s3008_s13 + $0x70] sm:$0xff]  ;;  %v1426_v15 = vld [vmem:[%s3008_s13 + $0x60] sm:$0xff] }
 0x39e   : > { %1435 = vmatpush.msra.mxu3 %v1428_v13 }
 0x39f   : > { %1593 = vmatpush.msrb.mxu1 %v1550_v16  ;;  %v2367_v55 = vld [vmem:[%s3005_s1] ss:$0 sm:$0xff]  ;;  %v1425_v16 = vld [vmem:[%s3008_s13 + $0x58] sm:$0xff] }
 0x3a0   : > { %v1247_v17 = vpop.f32.mrf.mxu3  ;;  %1436 = vmatpush.msra.mxu3 %v1427_v14 }
 0x3a1   : > { %1251 = vrot.lane.b32.xlu2 %v1247_v17, %s2962_s5  ;;  %s3006_s5 = sld [smem:[#allocation18_spill]]  ;;  %v1424_v17 = vld [vmem:[%s3008_s13 + $0x50] sm:$0xff] }
 0x3a2   : > { %1437 = vmatpush.msra.mxu3 %v1426_v15 }
 0x3a4   : > { %1438 = vmatpush.msra.mxu3 %v1425_v16 }
 0x3a6   : > { %1439 = vmatpush.msra.mxu3 %v1424_v17 }
 0x3a7   : > { %v2368_v5 = vld [vmem:[%s3006_s5] ss:$0 sm:$0xff]  ;;  %s3009_s5 = sld [smem:[#allocation21_spill]] }
 0x3a8   : > { %1440 = vmatpush.msra.mxu3 %v1423_v18 }
 0x3a9   : > { %1285 = vrot.lane.b32.xlu2 %v1281_v10, %s2960_s18  ;;  %s3004_s18 = sld [smem:[#allocation20_spill]] }
 0x3aa   : > { %1441 = vmatpush.msra.mxu3 %v1422_v19 }
 0x3ac   : > { %1442 = vmatpush.msra.mxu3 %v1421_v20 }
 0x3ae   : > { %1443 = vmatpush.msra.mxu3 %v1420_v21 }
 0x3af   : > { %v1367_v39 = vld [vmem:[%s3004_s18 + $0x18] sm:$0xff]  ;;  %v1366_v40 = vld [vmem:[%s3004_s18 + $0x10] sm:$0xff]  ;;  %v1365_v42 = vld [vmem:[%s3004_s18 + $0x8] sm:$0xff] }
 0x3b0   : > { %1387 = vmatpush.msra.mxu2 %v1367_v39  ;;  %v1364_v43 = vld [vmem:[%s3004_s18] sm:$0xff]  ;;  %1444 = vmatpush.msra.mxu3 %v1419_v22  ;;  %s3017_s18 = smov 104  }
 0x3b2   : > { %1388 = vmatpush.msra.mxu2 %v1366_v40  ;;  %1445 = vmatpush.msra.mxu3 %v1418_v24 }
 0x3b4   : > { %1389 = vmatpush.msra.mxu2 %v1365_v42  ;;  %1446 = vmatpush.msra.mxu3 %v1417_v25  ;;  %v1551_v25 = vld [vmem:[%s3013_s9] sm:$0xff] }
 0x3b6   : > { %1390 = vmatpush.msra.mxu2 %v1364_v43 }
 0x3fb   : > { %v1252_v26 = vpop.permute.xlu2 %1251 }
 0x403   : > { %v1286_v28 = vpop.permute.xlu2 %1285 }
 0x40b   : > { %v1218_v27 = vpop.permute.xlu1 %1217 }
 0x40c   : > { %1221 = vst.msk [vmem:[#allocation2] sm:$0xff] %vm1220_vm0, %v1218_v27  ;;  %v1415_v27 = vld [vmem:[%s3008_s13 + $0x8] sm:$0xff] }
 0x40d   : > { %1255 = vst.msk [vmem:[#allocation2] sm:$0xff] %vm1254_vm1, %v1252_v26  ;;  %v1416_v26 = vld [vmem:[%s3008_s13 + $0x10] sm:$0xff] }
 0x40e   : > { %1289 = vst.msk [vmem:[#allocation2] sm:$0xff] %vm1288_vm5, %v1286_v28  ;;  %1447 = vmatpush.msra.mxu3 %v1416_v26  ;;  %v1414_v28 = vld [vmem:[%s3008_s13] sm:$0xff]  ;;  %s3012_s13 = sld [smem:[#allocation25_spill]] }
 0x410   : > { %1448 = vmatpush.msra.mxu3 %v1415_v27 }
 0x412   : > { %1449 = vmatpush.msra.mxu3 %v1414_v28 }
 0x415   : > { %v1290_v30 = vld [vmem:[#allocation2] sm:$0xff] }
 0x416   : > { %v1292_v31 = vadd.f32 %v1291_v29, %v1290_v30  ;;  %v2370_v29 = vld [vmem:[%s3009_s5] ss:$0 sm:$0xff]  ;;  %s3011_s5 = sld [smem:[#allocation24_spill]] }
 0x418   : > { %2231 = vmatmul.msk.f32.vlgmr.msra.gmra.mxu0 %vm1131_vm14, %v1292_v31 }
 0x495   : > { %v1321_v35 = vpop.f32.mrf.mxu0 }
 0x496   : > { %v2795_v36 = vadd.f32 %v2366_v34, %v1321_v35 }
 0x498   : > { %2235 = vmatmul.msk.f32.vlgmr.msrb.gmra.mxu0 %vm1131_vm14, %v2795_v36  ;;  %v1324_v37 = vsub.f32 %v2749_v54, %v2795_v36 }
 0x49a   : > { %v1327_v38 = vsel %vm1131_vm14, %v1324_v37, 0.0 }
 0x49b   : > { %1328 = vadd.xlane.f32.xlu0 %v1327_v38 }
 0x50e   : > { %v1329_v51 = vpop.xlane.xlu0 %1328 }
 0x50f   : > { %v1337_v52 = vmul.f32 %v2806_v49, %v1329_v51 }
 0x511   : > { %v1338_v54 = vsub.f32 %v1324_v37, %v1337_v52 }
 0x513   : > { %v1339_v56 = vmul.f32 %v1338_v54, %v1338_v54 }
 0x515   : > { %v1546_v57 = vpop.f32.mrf.mxu0  ;;  %v1340_v58 = vsel %vm1131_vm14, %v1339_v56, 0.0 }
 0x516   : > { %v1547_v59 = vadd.f32 %v2367_v55, %v1546_v57  ;;  %1341 = vadd.xlane.f32.xlu1 %v1340_v58 }
 0x518   : > { %1570 = vmatpush.msrb.mxu2 %v1547_v59 }
 0x589   : > { %v1342_v60 = vpop.xlane.xlu1 %1341 }
 0x58a   : > { %v1343_v61 = vmul.f32 %v1342_v60, %v2806_v49 }
 0x58c   : > { %v1344_v62 = vadd.f32 1e-05, %v1343_v61 }
 0x58e   : > { %2381 = vrsqrt.f32 %v1344_v62  ;;  %vm1351_vm8 = vweird.f32 %v1344_v62 }
 0x594   : > { %v2382_v63 = vpop.eup %2381 }
 0x595   : > { %v1346_v0 = vmul.f32 %v2382_v63, %v1344_v62  ;;  %vm1352_vm7 = vweird.f32 %v2382_v63 }
 0x596   : > { %vm1353_vm9 = vmor %vm1351_vm8, %vm1352_vm7 }
 0x597   : > { %v1347_v1 = vmul.f32 %v2382_v63, %v1346_v0 }
 0x599   : > { %v1348_v2 = vmul.f32 0.5, %v1347_v1 }
 0x59b   : > { %v1349_v3 = vsub.f32 1.5, %v1348_v2 }
 0x59d   : > { %v1350_v4 = vmul.f32 %v2382_v63, %v1349_v3 }
 0x59f   : > { %v1354_v7 = vsel %vm1353_vm9, %v2382_v63, %v1350_v4  ;;  %v2372_v4 = vld [vmem:[%s3011_s5] ss:$0 sm:$0xff]  ;;  %s3014_s5 = sld [smem:[#allocation13_spill]] }
 0x5a0   : > { %v1355_v8 = vmul.f32 %v1354_v7, %v1338_v54 }
 0x5a2   : > { %v1359_v10 = vmul.f32 %v2368_v5, %v1355_v8  ;;  %v2373_v8 = vld [vmem:[%s3012_s13] ss:$0 sm:$0xff]  ;;  %s3015_s13 = smov 112  }
 0x5a4   : > { %v1363_v11 = vadd.f32 %v2369_v9, %v1359_v10 }
 0x5a6   : > { %2232 = vmatmul.msk.f32.vlgmr.msra.gmra.mxu2 %vm1131_vm14, %v1363_v11 }
 0x5ae   : > { %2236 = vmatmul.msk.f32.vlgmr.msrb.gmra.mxu2 %vm1009_vm2, %v1551_v25 }
 0x629   : > { %v1392_v30 = vpop.f32.mrf.mxu2 }
 0x62a   : > { %v1393_v31 = vadd.f32 %v2370_v29, %v1392_v30  ;;  %v1549_v29 = vld [vmem:[%s3014_s5] sm:$0xff] }
 0x62b   : > { %2237 = vmatmul.msk.f32.vlgmr.msrb.gmra.mxu1 %vm1009_vm2, %v1549_v29  ;;  %v2273_v29 = vld [vmem:[%s2574_s20 + $0x38] sm:$0xff] }
 0x62c   : > { %v2233_v32 = vmul.f32 -1.442695, %v1393_v31 }
 0x62e   : > { %2383 = vpow2.f32 %v2233_v32 }
 0x634   : > { %v2384_v33 = vpop.eup %2383 }
 0x635   : > { %v1398_v34 = vadd.f32 1.0, %v2384_v33 }
 0x637   : > { %2385 = vrcp.f32 %v1398_v34  ;;  %v1410_v39 = vand.u32 2147483648, %v1398_v34  ;;  %v1408_v41 = vand.u32 2147483647, %v1398_v34  ;;  %vm1404_vm6 = vweird.f32 %v1398_v34 }
 0x639   : > { %v1411_v43 = vor.u32 1.1754944e-38, %v1410_v39  ;;  %vm1409_vm8 = vcmp.eq.f32.partialorder %v1408_v41, 8.507059e+37 }
 0x63d   : > { %v2386_v35 = vpop.eup %2385 }
 0x63e   : > { %v1400_v37 = vmul.f32 %v2386_v35, %v1398_v34  ;;  %vm1405_vm10 = vweird.f32 %v2386_v35 }
 0x63f   : > { %vm1406_vm7 = vmor %vm1404_vm6, %vm1405_vm10 }
 0x640   : > { %v1401_v38 = vsub.f32 1.0, %v1400_v37 }
 0x642   : > { %v1402_v40 = vmul.f32 %v2386_v35, %v1401_v38 }
 0x644   : > { %v1403_v42 = vadd.f32 %v2386_v35, %v1402_v40 }
 0x646   : > { %v1407_v44 = vsel %vm1406_vm7, %v2386_v35, %v1403_v42 }
 0x647   : > { %v1412_v45 = vsel %vm1409_vm8, %v1411_v43, %v1407_v44 }
 0x648   : > { %1450 = vmatmul.f32.vlgmr.msra.gmra.mxu3 %v1412_v45 }
 0x6cb   : > { %v1451_v47 = vpop.f32.mrf.mxu3 }
 0x6cc   : > { %v1452_v48 = vadd.f32 %v2371_v46, %v1451_v47 }
 0x6ce   : > { %v1454_v51 = vadd.f32 %v1452_v48, %v1363_v11 }
 0x6d0   : > { %v1457_v52 = vsel %vm1131_vm14, %v1454_v51, 0.0 }
 0x6d1   : > { %1458 = vadd.xlane.f32.xlu2 %v1457_v52 }
 0x744   : > { %v1459_v54 = vpop.xlane.xlu2 %1458 }
 0x745   : > { %v1460_v55 = vmul.f32 %v1459_v54, %v2806_v49  ;;  %v2245_v54 = vld [vmem:[%s2529_s29 + $0x38] sm:$0xff] }
 0x746   : > { %1733 = vmatpush.msra.mxu1 %v2245_v54 }
 0x747   : > { %v1461_v56 = vsub.f32 %v1454_v51, %v1460_v55  ;;  %v2244_v55 = vld [vmem:[%s2529_s29 + $0x30] sm:$0xff] }
 0x748   : > { %1734 = vmatpush.msra.mxu1 %v2244_v55  ;;  %v2276_v55 = vld [vmem:[%s3014_s5 + $0x8] sm:$0xff] }
 0x749   : > { %v1462_v57 = vmul.f32 %v1461_v56, %v1461_v56 }
 0x74b   : > { %v1463_v58 = vsel %vm1131_vm14, %v1462_v57, 0.0  ;;  %v2242_v57 = vld [vmem:[%s2529_s29 + $0x20] sm:$0xff] }
 0x74c   : > { %1464 = vadd.xlane.f32.xlu2 %v1463_v58  ;;  %v1572_v58 = vpop.f32.mrf.mxu2 }
 0x7bf   : > { %v1465_v59 = vpop.xlane.xlu2 %1464 }
 0x7c0   : > { %v1466_v60 = vmul.f32 %v1465_v59, %v2806_v49  ;;  %v1601_v49 = vld [vmem:[%s2519_s21 + $0x8] sm:$0x3] }
 0x7c2   : > { %v1467_v61 = vadd.f32 1e-05, %v1466_v60 }
 0x7c4   : > { %2387 = vrsqrt.f32 %v1467_v61  ;;  %vm1474_vm10 = vweird.f32 %v1467_v61 }
 0x7ca   : > { %v2388_v62 = vpop.eup %2387 }
 0x7cb   : > { %v1469_v63 = vmul.f32 %v2388_v62, %v1467_v61  ;;  %vm1475_vm9 = vweird.f32 %v2388_v62  ;;  %v1595_v61 = vpop.f32.mrf.mxu1 }
 0x7cc   : > { %vm1476_vm6 = vmor %vm1474_vm10, %vm1475_vm9  ;;  %v1596_v25 = vadd.f32 %v1595_v61, %v1572_v58 }
 0x7cd   : > { %v1470_v0 = vmul.f32 %v2388_v62, %v1469_v63 }
 0x7cf   : > { %v1471_v1 = vmul.f32 0.5, %v1470_v0  ;;  %v2248_v0 = vld [vmem:[%s2549_s19 + $0x1] sm:$0x1] }
 0x7d1   : > { %v1472_v2 = vsub.f32 1.5, %v1471_v1 }
 0x7d3   : > { %v1473_v3 = vmul.f32 %v2388_v62, %v1472_v2 }
 0x7d5   : > { %v1477_v5 = vsel %vm1476_vm6, %v2388_v62, %v1473_v3  ;;  %v2374_v62 = vld [vmem:[%s2994_s3 + $0x1] ss:$0 sm:$0xff]  ;;  %s3021_s3 = smov 24  }
 0x7d6   : > { %v1478_v7 = vmul.f32 %v1477_v5, %v1461_v56  ;;  %v2243_v56 = vld [vmem:[%s2529_s29 + $0x28] sm:$0xff] }
 0x7d7   : > { %1735 = vmatpush.msra.mxu1 %v2243_v56  ;;  %v2377_v56 = vld [vmem:[%s3005_s1 + $0x1] ss:$0 sm:$0xff] }
 0x7d8   : > { %v1482_v9 = vmul.f32 %v2372_v4, %v1478_v7  ;;  %v2249_v4 = vld [vmem:[%s2554_s24 + $0x20] sm:$0xff]  ;;  %v2253_v7 = vld [vmem:[%s2554_s24 + $0x30] sm:$0xff] }
 0x7d9   : > { %1736 = vmatpush.msra.mxu1 %v2242_v57 }
 0x7da   : > { %v2839_v10 = vadd.f32 %v2373_v8, %v1482_v9  ;;  %v2251_v8 = vld [vmem:[%s2554_s24 + $0x28] sm:$0xff] }
 0x7dc   : > { %1623 = vmatpush.msra.mxu0 %v2839_v10 }
 0x7dd   : > { %2238 = vmatmul.msk.f32.vlgmr.msra.gmra.mxu0 %vm1009_vm2, %v2718_v6 }
 0x7e5   : > { %2239 = vmatmul.msk.f32.gmra.mxu0 %vm1009_vm2, %v1601_v49  ;;  %v2255_v49 = vld [vmem:[%s2554_s24 + $0x38] sm:$0xff] }
 0x85a   : > { %v1625_v11 = vpop.f32.mrf.mxu0 }
 0x85b   : > { %v1631_v12 = vmul.f32 %v1625_v11, %v1625_v11  ;;  %v1672_v45 = vrot.slane %v1625_v11, 5 }
 0x85d   : > { %v1635_v15 = vrot.slane %v1631_v12, 5 }
 0x862   : > { %v1628_v13 = vpop.f32.mrf.mxu0 }
 0x863   : > { %v1632_v14 = vmul.f32 %v1628_v13, %v1628_v13  ;;  %v1673_v44 = vrot.slane %v1628_v13, 5  ;;  %v2265_v13 = vld [vmem:[%s2993_s4 + $0x28] sm:$0xff] }
 0x865   : > { %v1636_v16 = vrot.slane %v1632_v14, 5  ;;  %v1674_v47 = vsel %vm1043_vm3, %v1672_v45, %v1673_v44  ;;  %v2264_v14 = vld [vmem:[%s2993_s4 + $0x20] sm:$0xff] }
 0x866   : > { %v2376_v44 = vld [vmem:[%s3003_s7 + $0x1] ss:$0 sm:$0xff] }
 0x867   : > { %v1637_v17 = vsel %vm1043_vm3, %v1635_v15, %v1636_v16  ;;  %vm2090_vm3 = vcmask 27648  }
 0x868   : > { %v1639_v18 = vadd.f32 %v1637_v17, %v1631_v12  ;;  %v2266_v12 = vld [vmem:[%s2993_s4 + $0x30] sm:$0xff]  ;;  %v2261_v17 = vld [vmem:[%s2539_s8 + $0x38] sm:$0xff] }
 0x869   : > { %1903 = vmatpush.msrb.mxu3 %v2261_v17 }
 0x86a   : > { %v1640_v19 = vsel %vm1051_vm4, %v1639_v18, -inf }
 0x86b   : > { %v1641_v20 = vrot.slane %v1640_v19, 4 }
 0x86d   : > { %v1642_v21 = vmax.f32 %v1640_v19, %v1641_v20  ;;  %v2259_v20 = vld [vmem:[%s2539_s8 + $0x28] sm:$0xff] }
 0x86f   : > { %v1643_v22 = vrot.slane %v1642_v21, 2 }
 0x871   : > { %v1644_v6 = vmax.f32 %v1642_v21, %v1643_v22  ;;  %v2375_v22 = vld [vmem:[%s2992_s6 + $0x1] ss:$0 sm:$0xff] }
 0x873   : > { %v1645_v24 = vrot.slane %v1644_v6, 1 }
 0x875   : > { %v1646_v26 = vmax.f32 %v1644_v6, %v1645_v24 }
 0x877   : > { %vm1647_vm7 = vcmp.ge.f32.partialorder %v1639_v18, %v1646_v26 }
 0x878   : > { %v1648_v27 = vsel %vm1647_vm7, %v2727_v23, 5 }
 0x879   : > { %v1649_v28 = vsel %vm1051_vm4, %v1648_v27, 2147483647 }
 0x87a   : > { %v1650_v30 = vrot.slane %v1649_v28, 4 }
 0x87c   : > { %vm1651_vm8 = vcmp.lt.s32.totalorder %v1649_v28, %v1650_v30 }
 0x87d   : > { %v1652_v31 = vsel %vm1651_vm8, %v1649_v28, %v1650_v30  ;;  %v2272_v30 = vld [vmem:[%s2574_s20 + $0x30] sm:$0xff] }
 0x87e   : > { %v1653_v32 = vrot.slane %v1652_v31, 2 }
 0x880   : > { %vm1654_vm9 = vcmp.lt.s32.totalorder %v1652_v31, %v1653_v32 }
 0x881   : > { %v1655_v33 = vsel %vm1654_vm9, %v1652_v31, %v1653_v32 }
 0x882   : > { %v1656_v34 = vrot.slane %v1655_v33, 1 }
 0x884   : > { %vm1657_vm10 = vcmp.lt.s32.totalorder %v1655_v33, %v1656_v34 }
 0x885   : > { %v1658_v35 = vsel %vm1657_vm10, %v1655_v33, %v1656_v34  ;;  %v2257_v34 = vld [vmem:[%s3002_s10 + $0x8] sm:$0xff] }
 0x886   : > { %vm1659_vm6 = vcmp.eq.s32.totalorder %v2727_v23, %v1658_v35 }
 0x887   : > { %v1660_v37 = vsel %vm1659_vm6, -inf, %v1639_v18 }
 0x888   : > { %v1661_v38 = vsel %vm1051_vm4, %v1660_v37, -inf }
 0x889   : > { %v1662_v39 = vrot.slane %v1661_v38, 4 }
 0x88b   : > { %v1663_v40 = vmax.f32 %v1661_v38, %v1662_v39  ;;  %v2271_v38 = vld [vmem:[%s2574_s20 + $0x28] sm:$0xff]  ;;  %v2270_v39 = vld [vmem:[%s2574_s20 + $0x20] sm:$0xff] }
 0x88d   : > { %v1664_v41 = vrot.slane %v1663_v40, 2 }
 0x88f   : > { %v1665_v42 = vmax.f32 %v1663_v40, %v1664_v41  ;;  %v2060_v40 = vld [vmem:[%s2644_s14 + $0x18] sm:$0xff]  ;;  %v2059_v41 = vld [vmem:[%s2644_s14 + $0x10] sm:$0xff] }
 0x891   : > { %v1666_v43 = vrot.slane %v1665_v42, 1 }
 0x893   : > { %v1667_v46 = vmax.f32 %v1665_v42, %v1666_v43  ;;  %v2058_v42 = vld [vmem:[%s2644_s14 + $0x8] sm:$0xff]  ;;  %v2057_v43 = vld [vmem:[%s2644_s14] sm:$0xff] }
 0x895   : > { %vm1668_vm7 = vcmp.ge.f32.partialorder %v1639_v18, %v1667_v46  ;;  %v2260_v18 = vld [vmem:[%s2539_s8 + $0x30] sm:$0xff] }
 0x896   : > { %v1676_v48 = vsel %vm1668_vm7, %v1674_v47, 0.0  ;;  %v1669_v51 = vsel %vm1668_vm7, %v1625_v11, 0.0  ;;  %1904 = vmatpush.msrb.mxu3 %v2260_v18 }
 0x897   : > { %v1678_v23 = vrot.slane %v1676_v48, 3  ;;  %v2031_v48 = vld [vmem:[%s2639_s27] sm:$0xf] }
 0x898   : > { %1905 = vmatpush.msrb.mxu3 %v2259_v20 }
 0x899   : > { %2240 = vmatpush.msk.msra.mxu2 %vm1099_vm11, %v1678_v23  ;;  %v1680_v52 = vsel %vm1092_vm12, %v1669_v51, %v1678_v23 }
 0x89b   : > { %1702 = vmatpush.msra.mxu2 %v1680_v52 }
 0x89c   : > { %2241 = vmatmul.msk.f32.vlgmr.msra.gmra.mxu2 %vm1095_vm13, %v2739_v50 }
 0x91f   : > { %v1704_v59 = vpop.f32.mrf.mxu2 }
 0x920   : > { %v1707_v60 = vsub.f32 %v2839_v10, %v1704_v59  ;;  %v2267_v10 = vld [vmem:[%s2993_s4 + $0x38] sm:$0xff]  ;;  %v2028_v15 = vadd.f32 %v1704_v59, %v2745_v53  ;;  %v2258_v53 = vld [vmem:[%s2539_s8 + $0x20] sm:$0xff] }
 0x921   : > { %1906 = vmatpush.msrb.mxu3 %v2258_v53 }
 0x922   : > { %2247 = vmatmul.msk.f32.vlgmr.msra.gmra.mxu1 %vm1131_vm14, %v1707_v60  ;;  %v2378_v60 = vld [vmem:[%s2649_s30] ss:$0 sm:$0xff] }
 0x99f   : > { %v1738_v50 = vpop.f32.mrf.mxu1 }
 0x9a0   : > { %v1739_v63 = vadd.f32 %v2374_v62, %v1738_v50 }
 0x9a2   : > { %v1744_v1 = vrot.slane %v1739_v63, 7 }
 0x9a4   : > { %v1746_v2 = vsel %vm1159_vm15, %v2248_v0, %v1744_v1 }
 0x9a5   : > { %v1747_v3 = vsub.f32 %v1739_v63, %v1746_v2 }
 0x9a7   : > { %1810 = vrot.lane.b32.xlu2 %v1747_v3, %s3015_s13  ;;  %1777 = vrot.lane.b32.xlu1 %v1747_v3, %s3016_s17  ;;  %s3018_s17 = smov 16   ;;  %s3020_s13 = smov 8  }
 0x9a8   : > { %1843 = vrot.lane.b32.xlu0 %v1747_v3, %s3017_s18  ;;  %1768 = vmatpush.msrb.mxu2 %v1747_v3  ;;  %s3019_s18 = sld [smem:[#allocation26_spill]] }
 0x9a9   : > { %2250 = vmatmul.msk.f32.vlgmr.msrb.gmra.mxu2 %vm1009_vm2, %v2249_v4 }
 0x9ae   : > { %v2030_v28 = vld [vmem:[%s3019_s18] sm:$0xf]  ;;  %s2283_s18 = sshll.u32 %s2677_s0, 2 }
 0xa01   : > { %v1811_v5 = vpop.permute.xlu2 %1810 }
 0xa02   : > { %1831 = vmatpush.msrb.mxu0 %v1811_v5 }
 0xa03   : > { %2254 = vmatmul.msk.f32.vlgmr.msrb.gmra.mxu0 %vm1009_vm2, %v2253_v7 }
 0xa04   : > { %1969 = vmatpush.msra.mxu0 %v2273_v29 }
 0xa06   : > { %1970 = vmatpush.msra.mxu0 %v2272_v30 }
 0xa08   : > { %1971 = vmatpush.msra.mxu0 %v2271_v38 }
 0xa0a   : > { %1972 = vmatpush.msra.mxu0 %v2270_v39 }
 0xa0c   : > { %2080 = vmatpush.msrb.mxu0 %v2060_v40 }
 0xa0e   : > { %2081 = vmatpush.msrb.mxu0 %v2059_v41 }
 0xa10   : > { %2082 = vmatpush.msrb.mxu0 %v2058_v42 }
 0xa12   : > { %2083 = vmatpush.msrb.mxu0 %v2057_v43 }
 0xa19   : > { %v1778_v9 = vpop.permute.xlu1 %1777 }
 0xa1a   : > { %v1844_v11 = vpop.permute.xlu0 %1843  ;;  %1798 = vmatpush.msrb.mxu1 %v1778_v9 }
 0xa1b   : > { %1864 = vmatpush.msra.mxu2 %v1844_v11  ;;  %2252 = vmatmul.msk.f32.vlgmr.msrb.gmra.mxu1 %vm1009_vm2, %v2251_v8 }
 0xa1c   : > { %1936 = vmatpush.msra.mxu1 %v2267_v10  ;;  %2256 = vmatmul.msk.f32.vlgmr.msra.gmra.mxu2 %vm1009_vm2, %v2255_v49 }
 0xa1e   : > { %1937 = vmatpush.msra.mxu1 %v2266_v12 }
 0xa20   : > { %1938 = vmatpush.msra.mxu1 %v2265_v13 }
 0xa22   : > { %1939 = vmatpush.msra.mxu1 %v2264_v14 }
 0xa23   : > { %2269 = vmatmul.msk.f32.vlgmr.msra.gmra.mxu1 %vm1131_vm14, %v1704_v59 }
 0xa24   : > { %2052 = vmatpush.msrb.mxu1 %v2028_v15 }
 0xa2b   : > { %2280 = vmatmul.msk.f32.vlgmr.msrb.gmra.mxu1 %vm1009_vm2, %v2030_v28 }
 0xa2c   : > { %v1770_v16 = vpop.f32.mrf.mxu2 }
 0xa2d   : > { %1773 = vst.msk [vmem:[#allocation2] sm:$0xff] %vm1009_vm2, %v1770_v16 }
 0xa80   : > { %v1833_v19 = vpop.f32.mrf.mxu0 }
 0xa81   : > { %1837 = vrot.lane.b32.xlu1 %v1833_v19, %s3018_s17 }
 0xa98   : > { %v1800_v21 = vpop.f32.mrf.mxu1 }
 0xa99   : > { %1804 = vrot.lane.b32.xlu0 %v1800_v21, %s3020_s13  ;;  %s2103_s13 = scalar_lea.hbm %s2654_s12, %s2283_s18 }
 0xa9a   : > { %s2107_s1 = sshll.u32 %s2103_s13, 4  ;;  %s2108_s1 = int_to_ptr.hbm [resolvable:$true] %s2107_s1 }
 0xa9b   : > { %s2403_s6 = sshra.s32 %s2108_s1, 4  ;;  %s2404_s6 = int_to_ptr.hbm [resolvable:$true] %s2403_s6 }
 0xa9c   : > { %s2405_s18 = scalar_lea.hbm %s2404_s6, 4  ;;  %p2410_p0 = scmp.lt.s32.totalorder %s2404_s6, %s2654_s12 }
 0xa9d   : > { %p2406_p11 = scmp.ne.s32.totalorder %s2404_s6, %s2405_s18 }
 0xa9f   : > { %v1866_v6 = vpop.f32.mrf.mxu2  ;;  %p2407_p12 = pnand %p2406_p11, %p2694_p5 }
 0xaa0   : > { %v1941_v24 = vpop.f32.mrf.mxu1 }
 0xaa1   : > { %1870 = vrot.lane.b32.xlu0 %v1866_v6, %s3021_s3  ;;  %v1942_v26 = vadd.f32 %v2375_v22, %v1941_v24  ;;  %s960_s3 = sand.u32 1, %s2443_s23   ;;  %p2408_p13 = pneg %p2407_p12 }
 0xaa2   : > { %s2214_s17 = sshll.u32 %s960_s3, 2  ;;  %s2093_s0 = scalar_lea.sflag [#allocation4], %s960_s3 }
 0xaa3   : > { %v1979_v27 = vsub.f32 %v1596_v25, %v1942_v26  ;;  %s962_s4 = scalar_lea.vmem [#allocation3], %s2214_s17  ;;  %s2409_s17 = scalar_lea.hbm %s2654_s12, 8 }
 0xaa4   : > { %s2105_s5 = sshll.u32 %s962_s4, 4  ;;  %p2411_p1 = scmp.lt.s32.totalorder %s2409_s17, %s2405_s18  ;;  %s2106_s5 = int_to_ptr.vmem [resolvable:$true] %s2105_s5 }
 0xaa5   : > { %2023 = vmatpush.msra.mxu3 %v1979_v27 }
 0xaa6   : > { %p2412_p2 = por %p2411_p1, %p2410_p0 }
 0xaa8   : > { %v2054_v51 = vpop.f32.mrf.mxu1  ;;  %p2413_p3 = pnand %p2412_p2, %p2408_p13 }
 0xaf3   : > { %v1838_v31 = vpop.permute.xlu1 %1837 }
 0xb0b   : > { %v1805_v32 = vpop.permute.xlu0 %1804 }
 0xb0c   : > { %1807 = vst.msk [vmem:[#allocation2] sm:$0xff] %vm1220_vm0, %v1805_v32 }
 0xb0d   : > { %1840 = vst.msk [vmem:[#allocation2] sm:$0xff] %vm1254_vm1, %v1838_v31 }
 0xb13   : > { %v1871_v33 = vpop.permute.xlu0 %1870 }
 0xb14   : > { %1873 = vst.msk [vmem:[#allocation2] sm:$0xff] %vm1288_vm5, %v1871_v33 }
 0xb1b   : > { %v1874_v35 = vld [vmem:[#allocation2] sm:$0xff] }
 0xb1c   : > { %v1877_v37 = vadd.f32 %v2257_v34, %v1874_v35 }
 0xb1e   : > { %2263 = vmatmul.msk.f32.vlgmr.msrb.gmra.mxu3 %vm1131_vm14, %v1877_v37 }
 0xb26   : > { %2279 = vmatmul.msk.f32.vlgmr.msra.gmra.mxu3 %vm1009_vm2, %v2276_v55 }
 0xba1   : > { %v1908_v45 = vpop.f32.mrf.mxu3 }
 0xba2   : > { %v1909_v46 = vadd.f32 %v2376_v44, %v1908_v45 }
 0xba4   : > { %v2029_v47 = vadd.f32 %v1909_v46, %v2795_v36  ;;  %2275 = vmatmul.msk.f32.vlgmr.msra.gmra.mxu0 %vm1131_vm14, %v1909_v46  ;;  %v2277_v36 = vld [vmem:[%s3013_s9 + $0x8] sm:$0xff] }
 0xba6   : > { %v2032_v23 = vperm.slane %v2029_v47, 7 }
 0xba8   : > { %v2033_v52 = vmul.f32 %v2032_v23, %v2031_v48 }
 0xba9   : > { %v2025_v59 = vpop.f32.mrf.mxu3 }
 0xbaa   : > { %v2055_v54 = vadd.f32 %v2054_v51, %v2033_v52 }
 0xbac   : > { %2281 = vmatmul.msk.f32.vlgmr.msrb.gmra.mxu0 %vm1131_vm14, %v2055_v54 }
 0xc21   : > { %v1974_v57 = vpop.f32.mrf.mxu0 }
 0xc22   : > { %v1975_v58 = vadd.f32 %v2377_v56, %v1974_v57 }
 0xc24   : > { %2000 = vmatpush.msrb.mxu2 %v1975_v58 }
 0xc25   : > { %2278 = vmatmul.msk.f32.vlgmr.msrb.gmra.mxu2 %vm1009_vm2, %v2277_v36 }
 0xc29   : > { %v2085_v61 = vpop.f32.mrf.mxu0 }
 0xc2a   : > { %v2086_v63 = vadd.f32 %v2378_v60, %v2085_v61 }
 0xca8   : > { %v2002_v62 = vpop.f32.mrf.mxu2 }
 0xca9   : > { %v2026_v50 = vadd.f32 %v2025_v59, %v2002_v62 }
 0xcab   : > { %v2088_v0 = vperm.slane %v2026_v50, 7 }
 0xcad   : > { %v2089_v1 = vadd.f32 %v2088_v0, %v2086_v63 }
 0xcaf   : > { %2091 = vst.msk [vmem:[%s962_s4] sm:$0xf] %vm2090_vm3, %v2089_v1 }
 0xcb0   : > { %2416 = shalt.err (!%p2413_p3)
}
 0xcb1   : > { %2286 = dma.vmem_to_hbm [thread:$0]  (%p2694_p5), %s2106_s5, 64, %s2108_s1, %s2093_s0  }
 0xcb2 PF: > { %p2292_p4 = scmp.ge.s32.totalorder %s2451_s28, 2  ;;  %s2119_s4 = sand.u32 1, %s2439_s22  }
 0xcb3   : > { %s2120_s3 = scalar_lea.sflag [#allocation4], %s2119_s4 }
 0xcb4   : > { %p2289_p7 = pnand %p2292_p4, %p2698_p6 }
 0xcb6   : > { %p2290_p8 = pneg %p2289_p7 }
 0xcb8   : > { %2434 = dma.done.wait (%p2290_p8), %s2120_s3, 64  }
 0xcb9   : > { %2436 = vsyncadd (%p2290_p8), %s2120_s3, 4294967232  ;;  %p73_p9 = scmp.ge.s32.totalorder %s2681_s2, 4   ;;  %s3022_s22 = smov %s2443_s23 }
 0xcba   : > { %s3023_s23 = smov %s2447_s26  ;;  %s3024_s26 = smov %s2692_s11 }
 0xcbb   : > { %s3025_s28 = smov %s2681_s2  ;;  %75 = sbr.rel (!%p73_p9) target bundleno = 57 (0x39), region = 232 }
 0xcc0   :  { %2126 = vsyncpa [#allocation4], 1 }
 0xcc1   :  { %2128 = vsyncpa [#allocation4 + $0x1], 1 }

</bundles_post_ra>
